<compile_context>
chip_gen: v6e
topology: v6e:2x2x1
jax: 0.10.0
libtpu: 0.0.40
codegen_flags: <defaults>
</compile_context>

<pallas_src>
import jax
import jax.numpy as jnp
from jax import lax
from jax.experimental import pallas as pl
from jax.experimental.pallas import tpu as pltpu

EPS = 1e-5
F_PAD = 128                       # lane-dense feature slab width
MATMUL_DTYPE = jnp.float32        # set to jnp.bfloat16 on v6e/v7x for the fast MXU path
VMEM_SPEC = pl.BlockSpec(memory_space=pltpu.MemorySpace.VMEM)


# ---------------------------------------------------------------------------
# in-kernel helpers
# ---------------------------------------------------------------------------
def _mm(a, b):
    """MXU matmul with f32 accumulation; operands optionally cast to bf16."""
    return jnp.dot(a.astype(MATMUL_DTYPE), b.astype(MATMUL_DTYPE),
                   preferred_element_type=jnp.float32)


def _bn(h, g, b):
    """BatchNorm1d, training-mode batch statistics over axis 0 (f32 math)."""
    mu = jnp.mean(h, axis=0, keepdims=True)
    var = jnp.mean((h - mu) ** 2, axis=0, keepdims=True)
    return (h - mu) * lax.rsqrt(var + EPS) * g + b


# ---------------------------------------------------------------------------
# fused kernel: bn0 + EdgeConv(encoder MLP) + EdgeConv(decoder MLP)
# ---------------------------------------------------------------------------
def fused_kernel(g_dst_ref, g_diff_ref, agg_ref, x_ref,
                 bn0_g, bn0_b,
                 # encoder EdgeConv MLP (Lin/ReLU/BN x4)
                 e_w1t, e_w1b, e_b1, e_g1, e_be1,
                 e_w2, e_b2, e_g2, e_be2,
                 e_w3, e_b3, e_g3, e_be3,
                 e_w4, e_b4, e_g4, e_be4,
                 # decoder EdgeConv MLP (Lin/ReLU/BN x3 + final Lin)
                 d_w1t, d_w1b, d_b1, d_g1, d_be1,
                 d_w2, d_b2, d_g2, d_be2,
                 d_w3, d_b3, d_g3, d_be3,
                 d_w4, d_b4,
                 out_ref):
    g_dst = g_dst_ref[...]     # [E, N]  one-hot of dst
    g_diff = g_diff_ref[...]   # [E, N]  one-hot(src) - one-hot(dst)
    agg = agg_ref[...]         # [N, E]  scatter-mean matrix

    # --- node-level BatchNorm1d(input_dim) --------------------------------
    h = _bn(x_ref[...], bn0_g[...], bn0_b[...])        # [N, F_PAD]

    # --- EdgeConv #1 (encoder) --------------------------------------------
    x_i = _mm(g_dst, h)                                # [E, F_PAD]  x[dst]
    d = _mm(g_diff, h)                                 # [E, F_PAD]  x[src] - x[dst]
    e = _mm(x_i, e_w1t[...]) + _mm(d, e_w1b[...]) + e_b1[...]
    e = _bn(jnp.maximum(e, 0.0), e_g1[...], e_be1[...])
    e = _mm(e, e_w2[...]) + e_b2[...]
    e = _bn(jnp.maximum(e, 0.0), e_g2[...], e_be2[...])
    e = _mm(e, e_w3[...]) + e_b3[...]
    e = _bn(jnp.maximum(e, 0.0), e_g3[...], e_be3[...])
    e = _mm(e, e_w4[...]) + e_b4[...]
    e = _bn(jnp.maximum(e, 0.0), e_g4[...], e_be4[...])
    h = _mm(agg, e)                                    # [N, F_PAD] scatter-mean

    # --- EdgeConv #2 (decoder) --------------------------------------------
    x_i = _mm(g_dst, h)
    d = _mm(g_diff, h)
    e = _mm(x_i, d_w1t[...]) + _mm(d, d_w1b[...]) + d_b1[...]
    e = _bn(jnp.maximum(e, 0.0), d_g1[...], d_be1[...])
    e = _mm(e, d_w2[...]) + d_b2[...]
    e = _bn(jnp.maximum(e, 0.0), d_g2[...], d_be2[...])
    e = _mm(e, d_w3[...]) + d_b3[...]
    e = _bn(jnp.maximum(e, 0.0), d_g3[...], d_be3[...])
    e = _mm(e, d_w4[...]) + d_b4[...]                  # final Linear: no ReLU / BN
    out_ref[...] = _mm(agg, e)                         # [N, F_PAD] lane-dense store


# ---------------------------------------------------------------------------
# wrapper
# ---------------------------------------------------------------------------
def edge_net_forward(g_dst, g_diff, agg, x_pad, params, input_dim):
    n, fp = x_pad.shape
    e = g_dst.shape[0]
    inputs = (g_dst, g_diff, agg, x_pad) + tuple(params)

    mm_flops = lambda m, k, c: 2 * m * k * c
    per_layer = (2 * mm_flops(e, n, fp)      # two gather matmuls
                 + 5 * mm_flops(e, fp, fp)   # split first lin (2) + 3 more lins
                 + mm_flops(n, e, fp))       # scatter-mean
    flops = 2 * per_layer
    bytes_accessed = sum(int(a.size) * a.dtype.itemsize for a in inputs) + n * fp * 4

    out = pl.pallas_call(
        fused_kernel,
        out_shape=jax.ShapeDtypeStruct((n, fp), jnp.float32),
        in_specs=[VMEM_SPEC] * len(inputs),
        out_specs=VMEM_SPEC,
        cost_estimate=pl.CostEstimate(
            flops=flops, transcendentals=9 * fp, bytes_accessed=bytes_accessed),
    )(*inputs)
    return out[:, :input_dim]


# ---------------------------------------------------------------------------
# parameter init (PyTorch-style; Linear weight stored as [fan_in, fan_out])
# ---------------------------------------------------------------------------
def init_linear(key, fan_in, fan_out):
    k1, k2 = jax.random.split(key)
    bound = 1.0 / (fan_in ** 0.5)
    w = jax.random.uniform(k1, (fan_in, fan_out), jnp.float32, -bound, bound)
    b = jax.random.uniform(k2, (1, fan_out), jnp.float32, -bound, bound)
    return w, b


def init_bn(f):
    return jnp.ones((1, f), jnp.float32), jnp.zeros((1, f), jnp.float32)


def pad_mat(w):
    out = jnp.zeros((F_PAD, F_PAD), jnp.float32)
    return out.at[: w.shape[0], : w.shape[1]].set(w)


def pad_vec(v):
    out = jnp.zeros((1, F_PAD), jnp.float32)
    return out.at[:, : v.shape[1]].set(v)


def pack_edgeconv_params(lins, bns, in_dim):
    """Split first Linear into top/bot halves, pad everything, kernel order."""
    w1, b1 = lins[0]
    p = [pad_mat(w1[:in_dim]), pad_mat(w1[in_dim:]), pad_vec(b1)]
    p += [pad_vec(bns[0][0]), pad_vec(bns[0][1])]
    for i in range(1, len(lins)):
        w, b = lins[i]
        p += [pad_mat(w), pad_vec(b)]
        if i < len(bns):
            p += [pad_vec(bns[i][0]), pad_vec(bns[i][1])]
    return p


# ---------------------------------------------------------------------------
# pure-JAX reference (true EdgeConv semantics: gather + concat + scatter-mean)
# ---------------------------------------------------------------------------
def bn_ref(h, g, b):
    mu = jnp.mean(h, axis=0, keepdims=True)
    var = jnp.mean((h - mu) ** 2, axis=0, keepdims=True)
    return (h - mu) * lax.rsqrt(var + EPS) * g + b


def mlp_ref(h, lins, bns):
    for i, (w, b) in enumerate(lins):
        h = jnp.dot(h, w, precision=lax.Precision.HIGHEST) + b
        if i < len(bns):
            h = jnp.maximum(h, 0.0)
            h = bn_ref(h, *bns[i])
    return h


def edgeconv_ref(x, src, dst, lins, bns, n):
    x_i = x[dst]
    x_j = x[src]
    m = mlp_ref(jnp.concatenate([x_i, x_j - x_i], axis=-1), lins, bns)
    summ = jnp.zeros((n, m.shape[-1]), m.dtype).at[dst].add(m)
    cnt = jnp.zeros((n,), m.dtype).at[dst].add(1.0)
    return summ / jnp.maximum(cnt, 1.0)[:, None]


# ---------------------------------------------------------------------------
# main
# ---------------------------------------------------------------------------
if __name__ == "__main__":
    input_dim, big_dim, hidden_dim = 4, 32, 2
    N, E = 16, 32

    root = jax.random.PRNGKey(0)
    keys = jax.random.split(root, 9)
    kx = keys[0]

    # node features [N, input_dim]
    x = jax.random.normal(kx, (N, input_dim), jnp.float32)

    # deterministic ring graph: src i -> dst (i+1)%N and (i+2)%N (E = 2N)
    src = jnp.concatenate([jnp.arange(N), jnp.arange(N)])
    dst = jnp.concatenate([(jnp.arange(N) + 1) % N, (jnp.arange(N) + 2) % N])

    g_src = jax.nn.one_hot(src, N, dtype=jnp.float32)          # [E, N]
    g_dst = jax.nn.one_hot(dst, N, dtype=jnp.float32)          # [E, N]
    g_diff = g_src - g_dst                                     # [E, N] -> x_j - x_i
    deg = jnp.maximum(g_dst.sum(axis=0), 1.0)                  # [N]
    agg = g_dst.T / deg[:, None]                               # [N, E] scatter-mean

    # layer definitions mirroring EdgeNetDeeper5.__init__
    enc_lin_dims = [(2 * input_dim, big_dim), (big_dim, big_dim),
                    (big_dim, big_dim), (big_dim, hidden_dim)]
    dec_lin_dims = [(2 * hidden_dim, big_dim), (big_dim, big_dim),
                    (big_dim, big_dim), (big_dim, input_dim)]

    enc_lins = [init_linear(keys[1 + i], fi, fo) for i, (fi, fo) in enumerate(enc_lin_dims)]
    dec_lins = [init_linear(keys[5 + i], fi, fo) for i, (fi, fo) in enumerate(dec_lin_dims)]
    enc_bns = [init_bn(f) for f in (big_dim, big_dim, big_dim, hidden_dim)]
    dec_bns = [init_bn(f) for f in (big_dim, big_dim, big_dim)]
    bn0_g, bn0_b = init_bn(input_dim)

    # padded / split parameters in exact kernel argument order
    kernel_params = ([pad_vec(bn0_g), pad_vec(bn0_b)]
                     + pack_edgeconv_params(enc_lins, enc_bns, input_dim)
                     + pack_edgeconv_params(dec_lins, dec_bns, hidden_dim))

    x_pad = jnp.pad(x, ((0, 0), (0, F_PAD - input_dim)))

    @jax.jit
    def forward_pallas(xp):
        return edge_net_forward(g_dst, g_diff, agg, xp, kernel_params, input_dim)

    def forward_ref(xr):
        h = bn_ref(xr, bn0_g, bn0_b)
        h = edgeconv_ref(h, src, dst, enc_lins, enc_bns, N)
        h = edgeconv_ref(h, src, dst, dec_lins, dec_bns, N)
        return h

    out = jax.block_until_ready(forward_pallas(x_pad))
    ref = jax.block_until_ready(forward_ref(x))

    assert out.shape == (N, input_dim), out.shape
    assert bool(jnp.all(jnp.isfinite(out)))
    tol = 1e-2 if MATMUL_DTYPE == jnp.float32 else 1e-1
    err = float(jnp.max(jnp.abs(out - ref)))
    assert err < tol, f"mismatch vs reference: {err}"

    print("KERNEL_OK")
</pallas_src>

<mosaic_0001>
module attributes {stable_mosaic.version = 11 : i64} {
  func.func @fused_kernel(%arg0: memref<32x16xf32, #tpu.memory_space<vmem>>, %arg1: memref<32x16xf32, #tpu.memory_space<vmem>>, %arg2: memref<16x32xf32, #tpu.memory_space<vmem>>, %arg3: memref<16x128xf32, #tpu.memory_space<vmem>>, %arg4: memref<1x128xf32, #tpu.memory_space<vmem>>, %arg5: memref<1x128xf32, #tpu.memory_space<vmem>>, %arg6: memref<128x128xf32, #tpu.memory_space<vmem>>, %arg7: memref<128x128xf32, #tpu.memory_space<vmem>>, %arg8: memref<1x128xf32, #tpu.memory_space<vmem>>, %arg9: memref<1x128xf32, #tpu.memory_space<vmem>>, %arg10: memref<1x128xf32, #tpu.memory_space<vmem>>, %arg11: memref<128x128xf32, #tpu.memory_space<vmem>>, %arg12: memref<1x128xf32, #tpu.memory_space<vmem>>, %arg13: memref<1x128xf32, #tpu.memory_space<vmem>>, %arg14: memref<1x128xf32, #tpu.memory_space<vmem>>, %arg15: memref<128x128xf32, #tpu.memory_space<vmem>>, %arg16: memref<1x128xf32, #tpu.memory_space<vmem>>, %arg17: memref<1x128xf32, #tpu.memory_space<vmem>>, %arg18: memref<1x128xf32, #tpu.memory_space<vmem>>, %arg19: memref<128x128xf32, #tpu.memory_space<vmem>>, %arg20: memref<1x128xf32, #tpu.memory_space<vmem>>, %arg21: memref<1x128xf32, #tpu.memory_space<vmem>>, %arg22: memref<1x128xf32, #tpu.memory_space<vmem>>, %arg23: memref<128x128xf32, #tpu.memory_space<vmem>>, %arg24: memref<128x128xf32, #tpu.memory_space<vmem>>, %arg25: memref<1x128xf32, #tpu.memory_space<vmem>>, %arg26: memref<1x128xf32, #tpu.memory_space<vmem>>, %arg27: memref<1x128xf32, #tpu.memory_space<vmem>>, %arg28: memref<128x128xf32, #tpu.memory_space<vmem>>, %arg29: memref<1x128xf32, #tpu.memory_space<vmem>>, %arg30: memref<1x128xf32, #tpu.memory_space<vmem>>, %arg31: memref<1x128xf32, #tpu.memory_space<vmem>>, %arg32: memref<128x128xf32, #tpu.memory_space<vmem>>, %arg33: memref<1x128xf32, #tpu.memory_space<vmem>>, %arg34: memref<1x128xf32, #tpu.memory_space<vmem>>, %arg35: memref<1x128xf32, #tpu.memory_space<vmem>>, %arg36: memref<128x128xf32, #tpu.memory_space<vmem>>, %arg37: memref<1x128xf32, #tpu.memory_space<vmem>>, %arg38: memref<16x128xf32, #tpu.memory_space<vmem>>) attributes {dimension_semantics = [], scalar_prefetch = 0 : i64, scratch_operands = 0 : i64, tpu.core_type = #tpu.core_type<tc>} {
    %c0 = arith.constant 0 : index
    %c0_0 = arith.constant 0 : index
    %0 = vector.load %arg0[%c0, %c0_0] : memref<32x16xf32, #tpu.memory_space<vmem>>, vector<32x16xf32>
    %c0_1 = arith.constant 0 : index
    %c0_2 = arith.constant 0 : index
    %1 = vector.load %arg1[%c0_1, %c0_2] : memref<32x16xf32, #tpu.memory_space<vmem>>, vector<32x16xf32>
    %c0_3 = arith.constant 0 : index
    %c0_4 = arith.constant 0 : index
    %2 = vector.load %arg2[%c0_3, %c0_4] : memref<16x32xf32, #tpu.memory_space<vmem>>, vector<16x32xf32>
    %c0_5 = arith.constant 0 : index
    %c0_6 = arith.constant 0 : index
    %3 = vector.load %arg3[%c0_5, %c0_6] : memref<16x128xf32, #tpu.memory_space<vmem>>, vector<16x128xf32>
    %c0_7 = arith.constant 0 : index
    %c0_8 = arith.constant 0 : index
    %4 = vector.load %arg4[%c0_7, %c0_8] : memref<1x128xf32, #tpu.memory_space<vmem>>, vector<1x128xf32>
    %c0_9 = arith.constant 0 : index
    %c0_10 = arith.constant 0 : index
    %5 = vector.load %arg5[%c0_9, %c0_10] : memref<1x128xf32, #tpu.memory_space<vmem>>, vector<1x128xf32>
    %cst = arith.constant dense<0.000000e+00> : vector<128xf32>
    %6 = vector.multi_reduction <add>, %3, %cst [0] : vector<16x128xf32> to vector<128xf32>
    %7 = vector.shape_cast %6 : vector<128xf32> to vector<1x128xf32>
    %cst_11 = arith.constant 1.600000e+01 : f32
    %8 = vector.broadcast %cst_11 : f32 to vector<1x128xf32>
    %9 = arith.divf %7, %8 : vector<1x128xf32>
    %10 = vector.broadcast %9 : vector<1x128xf32> to vector<16x128xf32>
    %11 = arith.subf %3, %10 : vector<16x128xf32>
    %12 = arith.mulf %11, %11 : vector<16x128xf32>
    %cst_12 = arith.constant dense<0.000000e+00> : vector<128xf32>
    %13 = vector.multi_reduction <add>, %12, %cst_12 [0] : vector<16x128xf32> to vector<128xf32>
    %14 = vector.shape_cast %13 : vector<128xf32> to vector<1x128xf32>
    %cst_13 = arith.constant 1.600000e+01 : f32
    %15 = vector.broadcast %cst_13 : f32 to vector<1x128xf32>
    %16 = arith.divf %14, %15 : vector<1x128xf32>
    %17 = vector.broadcast %9 : vector<1x128xf32> to vector<16x128xf32>
    %18 = arith.subf %3, %17 : vector<16x128xf32>
    %cst_14 = arith.constant 9.99999974E-6 : f32
    %19 = vector.broadcast %cst_14 : f32 to vector<1x128xf32>
    %20 = arith.addf %16, %19 : vector<1x128xf32>
    %21 = math.rsqrt %20 : vector<1x128xf32>
    %22 = vector.broadcast %21 : vector<1x128xf32> to vector<16x128xf32>
    %23 = arith.mulf %18, %22 : vector<16x128xf32>
    %24 = vector.broadcast %4 : vector<1x128xf32> to vector<16x128xf32>
    %25 = arith.mulf %23, %24 : vector<16x128xf32>
    %26 = vector.broadcast %5 : vector<1x128xf32> to vector<16x128xf32>
    %27 = arith.addf %25, %26 : vector<16x128xf32>
    %cst_15 = arith.constant dense<0.000000e+00> : vector<32x128xf32>
    %28 = tpu.matmul %0, %27, %cst_15 {dimension_numbers = #tpu.dot_dimension_numbers<[1], [0], [0], [1], [0, 0, 1, 1], [], []>} : vector<32x16xf32>, vector<16x128xf32>, vector<32x128xf32> -> vector<32x128xf32>
    %cst_16 = arith.constant dense<0.000000e+00> : vector<32x128xf32>
    %29 = tpu.matmul %1, %27, %cst_16 {dimension_numbers = #tpu.dot_dimension_numbers<[1], [0], [0], [1], [0, 0, 1, 1], [], []>} : vector<32x16xf32>, vector<16x128xf32>, vector<32x128xf32> -> vector<32x128xf32>
    %c0_17 = arith.constant 0 : index
    %c0_18 = arith.constant 0 : index
    %30 = vector.load %arg6[%c0_17, %c0_18] : memref<128x128xf32, #tpu.memory_space<vmem>>, vector<128x128xf32>
    %cst_19 = arith.constant dense<0.000000e+00> : vector<32x128xf32>
    %31 = tpu.matmul %28, %30, %cst_19 {dimension_numbers = #tpu.dot_dimension_numbers<[1], [0], [0], [1], [0, 0, 1, 1], [], []>} : vector<32x128xf32>, vector<128x128xf32>, vector<32x128xf32> -> vector<32x128xf32>
    %c0_20 = arith.constant 0 : index
    %c0_21 = arith.constant 0 : index
    %32 = vector.load %arg7[%c0_20, %c0_21] : memref<128x128xf32, #tpu.memory_space<vmem>>, vector<128x128xf32>
    %cst_22 = arith.constant dense<0.000000e+00> : vector<32x128xf32>
    %33 = tpu.matmul %29, %32, %cst_22 {dimension_numbers = #tpu.dot_dimension_numbers<[1], [0], [0], [1], [0, 0, 1, 1], [], []>} : vector<32x128xf32>, vector<128x128xf32>, vector<32x128xf32> -> vector<32x128xf32>
    %34 = arith.addf %31, %33 : vector<32x128xf32>
    %c0_23 = arith.constant 0 : index
    %c0_24 = arith.constant 0 : index
    %35 = vector.load %arg8[%c0_23, %c0_24] : memref<1x128xf32, #tpu.memory_space<vmem>>, vector<1x128xf32>
    %36 = vector.broadcast %35 : vector<1x128xf32> to vector<32x128xf32>
    %37 = arith.addf %34, %36 : vector<32x128xf32>
    %cst_25 = arith.constant 0.000000e+00 : f32
    %38 = vector.broadcast %cst_25 : f32 to vector<32x128xf32>
    %39 = arith.maximumf %37, %38 : vector<32x128xf32>
    %c0_26 = arith.constant 0 : index
    %c0_27 = arith.constant 0 : index
    %40 = vector.load %arg9[%c0_26, %c0_27] : memref<1x128xf32, #tpu.memory_space<vmem>>, vector<1x128xf32>
    %c0_28 = arith.constant 0 : index
    %c0_29 = arith.constant 0 : index
    %41 = vector.load %arg10[%c0_28, %c0_29] : memref<1x128xf32, #tpu.memory_space<vmem>>, vector<1x128xf32>
    %cst_30 = arith.constant dense<0.000000e+00> : vector<128xf32>
    %42 = vector.multi_reduction <add>, %39, %cst_30 [0] : vector<32x128xf32> to vector<128xf32>
    %43 = vector.shape_cast %42 : vector<128xf32> to vector<1x128xf32>
    %cst_31 = arith.constant 3.200000e+01 : f32
    %44 = vector.broadcast %cst_31 : f32 to vector<1x128xf32>
    %45 = arith.divf %43, %44 : vector<1x128xf32>
    %46 = vector.broadcast %45 : vector<1x128xf32> to vector<32x128xf32>
    %47 = arith.subf %39, %46 : vector<32x128xf32>
    %48 = arith.mulf %47, %47 : vector<32x128xf32>
    %cst_32 = arith.constant dense<0.000000e+00> : vector<128xf32>
    %49 = vector.multi_reduction <add>, %48, %cst_32 [0] : vector<32x128xf32> to vector<128xf32>
    %50 = vector.shape_cast %49 : vector<128xf32> to vector<1x128xf32>
    %cst_33 = arith.constant 3.200000e+01 : f32
    %51 = vector.broadcast %cst_33 : f32 to vector<1x128xf32>
    %52 = arith.divf %50, %51 : vector<1x128xf32>
    %53 = vector.broadcast %45 : vector<1x128xf32> to vector<32x128xf32>
    %54 = arith.subf %39, %53 : vector<32x128xf32>
    %cst_34 = arith.constant 9.99999974E-6 : f32
    %55 = vector.broadcast %cst_34 : f32 to vector<1x128xf32>
    %56 = arith.addf %52, %55 : vector<1x128xf32>
    %57 = math.rsqrt %56 : vector<1x128xf32>
    %58 = vector.broadcast %57 : vector<1x128xf32> to vector<32x128xf32>
    %59 = arith.mulf %54, %58 : vector<32x128xf32>
    %60 = vector.broadcast %40 : vector<1x128xf32> to vector<32x128xf32>
    %61 = arith.mulf %59, %60 : vector<32x128xf32>
    %62 = vector.broadcast %41 : vector<1x128xf32> to vector<32x128xf32>
    %63 = arith.addf %61, %62 : vector<32x128xf32>
    %c0_35 = arith.constant 0 : index
    %c0_36 = arith.constant 0 : index
    %64 = vector.load %arg11[%c0_35, %c0_36] : memref<128x128xf32, #tpu.memory_space<vmem>>, vector<128x128xf32>
    %cst_37 = arith.constant dense<0.000000e+00> : vector<32x128xf32>
    %65 = tpu.matmul %63, %64, %cst_37 {dimension_numbers = #tpu.dot_dimension_numbers<[1], [0], [0], [1], [0, 0, 1, 1], [], []>} : vector<32x128xf32>, vector<128x128xf32>, vector<32x128xf32> -> vector<32x128xf32>
    %c0_38 = arith.constant 0 : index
    %c0_39 = arith.constant 0 : index
    %66 = vector.load %arg12[%c0_38, %c0_39] : memref<1x128xf32, #tpu.memory_space<vmem>>, vector<1x128xf32>
    %67 = vector.broadcast %66 : vector<1x128xf32> to vector<32x128xf32>
    %68 = arith.addf %65, %67 : vector<32x128xf32>
    %cst_40 = arith.constant 0.000000e+00 : f32
    %69 = vector.broadcast %cst_40 : f32 to vector<32x128xf32>
    %70 = arith.maximumf %68, %69 : vector<32x128xf32>
    %c0_41 = arith.constant 0 : index
    %c0_42 = arith.constant 0 : index
    %71 = vector.load %arg13[%c0_41, %c0_42] : memref<1x128xf32, #tpu.memory_space<vmem>>, vector<1x128xf32>
    %c0_43 = arith.constant 0 : index
    %c0_44 = arith.constant 0 : index
    %72 = vector.load %arg14[%c0_43, %c0_44] : memref<1x128xf32, #tpu.memory_space<vmem>>, vector<1x128xf32>
    %cst_45 = arith.constant dense<0.000000e+00> : vector<128xf32>
    %73 = vector.multi_reduction <add>, %70, %cst_45 [0] : vector<32x128xf32> to vector<128xf32>
    %74 = vector.shape_cast %73 : vector<128xf32> to vector<1x128xf32>
    %cst_46 = arith.constant 3.200000e+01 : f32
    %75 = vector.broadcast %cst_46 : f32 to vector<1x128xf32>
    %76 = arith.divf %74, %75 : vector<1x128xf32>
    %77 = vector.broadcast %76 : vector<1x128xf32> to vector<32x128xf32>
    %78 = arith.subf %70, %77 : vector<32x128xf32>
    %79 = arith.mulf %78, %78 : vector<32x128xf32>
    %cst_47 = arith.constant dense<0.000000e+00> : vector<128xf32>
    %80 = vector.multi_reduction <add>, %79, %cst_47 [0] : vector<32x128xf32> to vector<128xf32>
    %81 = vector.shape_cast %80 : vector<128xf32> to vector<1x128xf32>
    %cst_48 = arith.constant 3.200000e+01 : f32
    %82 = vector.broadcast %cst_48 : f32 to vector<1x128xf32>
    %83 = arith.divf %81, %82 : vector<1x128xf32>
    %84 = vector.broadcast %76 : vector<1x128xf32> to vector<32x128xf32>
    %85 = arith.subf %70, %84 : vector<32x128xf32>
    %cst_49 = arith.constant 9.99999974E-6 : f32
    %86 = vector.broadcast %cst_49 : f32 to vector<1x128xf32>
    %87 = arith.addf %83, %86 : vector<1x128xf32>
    %88 = math.rsqrt %87 : vector<1x128xf32>
    %89 = vector.broadcast %88 : vector<1x128xf32> to vector<32x128xf32>
    %90 = arith.mulf %85, %89 : vector<32x128xf32>
    %91 = vector.broadcast %71 : vector<1x128xf32> to vector<32x128xf32>
    %92 = arith.mulf %90, %91 : vector<32x128xf32>
    %93 = vector.broadcast %72 : vector<1x128xf32> to vector<32x128xf32>
    %94 = arith.addf %92, %93 : vector<32x128xf32>
    %c0_50 = arith.constant 0 : index
    %c0_51 = arith.constant 0 : index
    %95 = vector.load %arg15[%c0_50, %c0_51] : memref<128x128xf32, #tpu.memory_space<vmem>>, vector<128x128xf32>
    %cst_52 = arith.constant dense<0.000000e+00> : vector<32x128xf32>
    %96 = tpu.matmul %94, %95, %cst_52 {dimension_numbers = #tpu.dot_dimension_numbers<[1], [0], [0], [1], [0, 0, 1, 1], [], []>} : vector<32x128xf32>, vector<128x128xf32>, vector<32x128xf32> -> vector<32x128xf32>
    %c0_53 = arith.constant 0 : index
    %c0_54 = arith.constant 0 : index
    %97 = vector.load %arg16[%c0_53, %c0_54] : memref<1x128xf32, #tpu.memory_space<vmem>>, vector<1x128xf32>
    %98 = vector.broadcast %97 : vector<1x128xf32> to vector<32x128xf32>
    %99 = arith.addf %96, %98 : vector<32x128xf32>
    %cst_55 = arith.constant 0.000000e+00 : f32
    %100 = vector.broadcast %cst_55 : f32 to vector<32x128xf32>
    %101 = arith.maximumf %99, %100 : vector<32x128xf32>
    %c0_56 = arith.constant 0 : index
    %c0_57 = arith.constant 0 : index
    %102 = vector.load %arg17[%c0_56, %c0_57] : memref<1x128xf32, #tpu.memory_space<vmem>>, vector<1x128xf32>
    %c0_58 = arith.constant 0 : index
    %c0_59 = arith.constant 0 : index
    %103 = vector.load %arg18[%c0_58, %c0_59] : memref<1x128xf32, #tpu.memory_space<vmem>>, vector<1x128xf32>
    %cst_60 = arith.constant dense<0.000000e+00> : vector<128xf32>
    %104 = vector.multi_reduction <add>, %101, %cst_60 [0] : vector<32x128xf32> to vector<128xf32>
    %105 = vector.shape_cast %104 : vector<128xf32> to vector<1x128xf32>
    %cst_61 = arith.constant 3.200000e+01 : f32
    %106 = vector.broadcast %cst_61 : f32 to vector<1x128xf32>
    %107 = arith.divf %105, %106 : vector<1x128xf32>
    %108 = vector.broadcast %107 : vector<1x128xf32> to vector<32x128xf32>
    %109 = arith.subf %101, %108 : vector<32x128xf32>
    %110 = arith.mulf %109, %109 : vector<32x128xf32>
    %cst_62 = arith.constant dense<0.000000e+00> : vector<128xf32>
    %111 = vector.multi_reduction <add>, %110, %cst_62 [0] : vector<32x128xf32> to vector<128xf32>
    %112 = vector.shape_cast %111 : vector<128xf32> to vector<1x128xf32>
    %cst_63 = arith.constant 3.200000e+01 : f32
    %113 = vector.broadcast %cst_63 : f32 to vector<1x128xf32>
    %114 = arith.divf %112, %113 : vector<1x128xf32>
    %115 = vector.broadcast %107 : vector<1x128xf32> to vector<32x128xf32>
    %116 = arith.subf %101, %115 : vector<32x128xf32>
    %cst_64 = arith.constant 9.99999974E-6 : f32
    %117 = vector.broadcast %cst_64 : f32 to vector<1x128xf32>
    %118 = arith.addf %114, %117 : vector<1x128xf32>
    %119 = math.rsqrt %118 : vector<1x128xf32>
    %120 = vector.broadcast %119 : vector<1x128xf32> to vector<32x128xf32>
    %121 = arith.mulf %116, %120 : vector<32x128xf32>
    %122 = vector.broadcast %102 : vector<1x128xf32> to vector<32x128xf32>
    %123 = arith.mulf %121, %122 : vector<32x128xf32>
    %124 = vector.broadcast %103 : vector<1x128xf32> to vector<32x128xf32>
    %125 = arith.addf %123, %124 : vector<32x128xf32>
    %c0_65 = arith.constant 0 : index
    %c0_66 = arith.constant 0 : index
    %126 = vector.load %arg19[%c0_65, %c0_66] : memref<128x128xf32, #tpu.memory_space<vmem>>, vector<128x128xf32>
    %cst_67 = arith.constant dense<0.000000e+00> : vector<32x128xf32>
    %127 = tpu.matmul %125, %126, %cst_67 {dimension_numbers = #tpu.dot_dimension_numbers<[1], [0], [0], [1], [0, 0, 1, 1], [], []>} : vector<32x128xf32>, vector<128x128xf32>, vector<32x128xf32> -> vector<32x128xf32>
    %c0_68 = arith.constant 0 : index
    %c0_69 = arith.constant 0 : index
    %128 = vector.load %arg20[%c0_68, %c0_69] : memref<1x128xf32, #tpu.memory_space<vmem>>, vector<1x128xf32>
    %129 = vector.broadcast %128 : vector<1x128xf32> to vector<32x128xf32>
    %130 = arith.addf %127, %129 : vector<32x128xf32>
    %cst_70 = arith.constant 0.000000e+00 : f32
    %131 = vector.broadcast %cst_70 : f32 to vector<32x128xf32>
    %132 = arith.maximumf %130, %131 : vector<32x128xf32>
    %c0_71 = arith.constant 0 : index
    %c0_72 = arith.constant 0 : index
    %133 = vector.load %arg21[%c0_71, %c0_72] : memref<1x128xf32, #tpu.memory_space<vmem>>, vector<1x128xf32>
    %c0_73 = arith.constant 0 : index
    %c0_74 = arith.constant 0 : index
    %134 = vector.load %arg22[%c0_73, %c0_74] : memref<1x128xf32, #tpu.memory_space<vmem>>, vector<1x128xf32>
    %cst_75 = arith.constant dense<0.000000e+00> : vector<128xf32>
    %135 = vector.multi_reduction <add>, %132, %cst_75 [0] : vector<32x128xf32> to vector<128xf32>
    %136 = vector.shape_cast %135 : vector<128xf32> to vector<1x128xf32>
    %cst_76 = arith.constant 3.200000e+01 : f32
    %137 = vector.broadcast %cst_76 : f32 to vector<1x128xf32>
    %138 = arith.divf %136, %137 : vector<1x128xf32>
    %139 = vector.broadcast %138 : vector<1x128xf32> to vector<32x128xf32>
    %140 = arith.subf %132, %139 : vector<32x128xf32>
    %141 = arith.mulf %140, %140 : vector<32x128xf32>
    %cst_77 = arith.constant dense<0.000000e+00> : vector<128xf32>
    %142 = vector.multi_reduction <add>, %141, %cst_77 [0] : vector<32x128xf32> to vector<128xf32>
    %143 = vector.shape_cast %142 : vector<128xf32> to vector<1x128xf32>
    %cst_78 = arith.constant 3.200000e+01 : f32
    %144 = vector.broadcast %cst_78 : f32 to vector<1x128xf32>
    %145 = arith.divf %143, %144 : vector<1x128xf32>
    %146 = vector.broadcast %138 : vector<1x128xf32> to vector<32x128xf32>
    %147 = arith.subf %132, %146 : vector<32x128xf32>
    %cst_79 = arith.constant 9.99999974E-6 : f32
    %148 = vector.broadcast %cst_79 : f32 to vector<1x128xf32>
    %149 = arith.addf %145, %148 : vector<1x128xf32>
    %150 = math.rsqrt %149 : vector<1x128xf32>
    %151 = vector.broadcast %150 : vector<1x128xf32> to vector<32x128xf32>
    %152 = arith.mulf %147, %151 : vector<32x128xf32>
    %153 = vector.broadcast %133 : vector<1x128xf32> to vector<32x128xf32>
    %154 = arith.mulf %152, %153 : vector<32x128xf32>
    %155 = vector.broadcast %134 : vector<1x128xf32> to vector<32x128xf32>
    %156 = arith.addf %154, %155 : vector<32x128xf32>
    %cst_80 = arith.constant dense<0.000000e+00> : vector<16x128xf32>
    %157 = tpu.matmul %2, %156, %cst_80 {dimension_numbers = #tpu.dot_dimension_numbers<[1], [0], [0], [1], [0, 0, 1, 1], [], []>} : vector<16x32xf32>, vector<32x128xf32>, vector<16x128xf32> -> vector<16x128xf32>
    %cst_81 = arith.constant dense<0.000000e+00> : vector<32x128xf32>
    %158 = tpu.matmul %0, %157, %cst_81 {dimension_numbers = #tpu.dot_dimension_numbers<[1], [0], [0], [1], [0, 0, 1, 1], [], []>} : vector<32x16xf32>, vector<16x128xf32>, vector<32x128xf32> -> vector<32x128xf32>
    %cst_82 = arith.constant dense<0.000000e+00> : vector<32x128xf32>
    %159 = tpu.matmul %1, %157, %cst_82 {dimension_numbers = #tpu.dot_dimension_numbers<[1], [0], [0], [1], [0, 0, 1, 1], [], []>} : vector<32x16xf32>, vector<16x128xf32>, vector<32x128xf32> -> vector<32x128xf32>
    %c0_83 = arith.constant 0 : index
    %c0_84 = arith.constant 0 : index
    %160 = vector.load %arg23[%c0_83, %c0_84] : memref<128x128xf32, #tpu.memory_space<vmem>>, vector<128x128xf32>
    %cst_85 = arith.constant dense<0.000000e+00> : vector<32x128xf32>
    %161 = tpu.matmul %158, %160, %cst_85 {dimension_numbers = #tpu.dot_dimension_numbers<[1], [0], [0], [1], [0, 0, 1, 1], [], []>} : vector<32x128xf32>, vector<128x128xf32>, vector<32x128xf32> -> vector<32x128xf32>
    %c0_86 = arith.constant 0 : index
    %c0_87 = arith.constant 0 : index
    %162 = vector.load %arg24[%c0_86, %c0_87] : memref<128x128xf32, #tpu.memory_space<vmem>>, vector<128x128xf32>
    %cst_88 = arith.constant dense<0.000000e+00> : vector<32x128xf32>
    %163 = tpu.matmul %159, %162, %cst_88 {dimension_numbers = #tpu.dot_dimension_numbers<[1], [0], [0], [1], [0, 0, 1, 1], [], []>} : vector<32x128xf32>, vector<128x128xf32>, vector<32x128xf32> -> vector<32x128xf32>
    %164 = arith.addf %161, %163 : vector<32x128xf32>
    %c0_89 = arith.constant 0 : index
    %c0_90 = arith.constant 0 : index
    %165 = vector.load %arg25[%c0_89, %c0_90] : memref<1x128xf32, #tpu.memory_space<vmem>>, vector<1x128xf32>
    %166 = vector.broadcast %165 : vector<1x128xf32> to vector<32x128xf32>
    %167 = arith.addf %164, %166 : vector<32x128xf32>
    %cst_91 = arith.constant 0.000000e+00 : f32
    %168 = vector.broadcast %cst_91 : f32 to vector<32x128xf32>
    %169 = arith.maximumf %167, %168 : vector<32x128xf32>
    %c0_92 = arith.constant 0 : index
    %c0_93 = arith.constant 0 : index
    %170 = vector.load %arg26[%c0_92, %c0_93] : memref<1x128xf32, #tpu.memory_space<vmem>>, vector<1x128xf32>
    %c0_94 = arith.constant 0 : index
    %c0_95 = arith.constant 0 : index
    %171 = vector.load %arg27[%c0_94, %c0_95] : memref<1x128xf32, #tpu.memory_space<vmem>>, vector<1x128xf32>
    %cst_96 = arith.constant dense<0.000000e+00> : vector<128xf32>
    %172 = vector.multi_reduction <add>, %169, %cst_96 [0] : vector<32x128xf32> to vector<128xf32>
    %173 = vector.shape_cast %172 : vector<128xf32> to vector<1x128xf32>
    %cst_97 = arith.constant 3.200000e+01 : f32
    %174 = vector.broadcast %cst_97 : f32 to vector<1x128xf32>
    %175 = arith.divf %173, %174 : vector<1x128xf32>
    %176 = vector.broadcast %175 : vector<1x128xf32> to vector<32x128xf32>
    %177 = arith.subf %169, %176 : vector<32x128xf32>
    %178 = arith.mulf %177, %177 : vector<32x128xf32>
    %cst_98 = arith.constant dense<0.000000e+00> : vector<128xf32>
    %179 = vector.multi_reduction <add>, %178, %cst_98 [0] : vector<32x128xf32> to vector<128xf32>
    %180 = vector.shape_cast %179 : vector<128xf32> to vector<1x128xf32>
    %cst_99 = arith.constant 3.200000e+01 : f32
    %181 = vector.broadcast %cst_99 : f32 to vector<1x128xf32>
    %182 = arith.divf %180, %181 : vector<1x128xf32>
    %183 = vector.broadcast %175 : vector<1x128xf32> to vector<32x128xf32>
    %184 = arith.subf %169, %183 : vector<32x128xf32>
    %cst_100 = arith.constant 9.99999974E-6 : f32
    %185 = vector.broadcast %cst_100 : f32 to vector<1x128xf32>
    %186 = arith.addf %182, %185 : vector<1x128xf32>
    %187 = math.rsqrt %186 : vector<1x128xf32>
    %188 = vector.broadcast %187 : vector<1x128xf32> to vector<32x128xf32>
    %189 = arith.mulf %184, %188 : vector<32x128xf32>
    %190 = vector.broadcast %170 : vector<1x128xf32> to vector<32x128xf32>
    %191 = arith.mulf %189, %190 : vector<32x128xf32>
    %192 = vector.broadcast %171 : vector<1x128xf32> to vector<32x128xf32>
    %193 = arith.addf %191, %192 : vector<32x128xf32>
    %c0_101 = arith.constant 0 : index
    %c0_102 = arith.constant 0 : index
    %194 = vector.load %arg28[%c0_101, %c0_102] : memref<128x128xf32, #tpu.memory_space<vmem>>, vector<128x128xf32>
    %cst_103 = arith.constant dense<0.000000e+00> : vector<32x128xf32>
    %195 = tpu.matmul %193, %194, %cst_103 {dimension_numbers = #tpu.dot_dimension_numbers<[1], [0], [0], [1], [0, 0, 1, 1], [], []>} : vector<32x128xf32>, vector<128x128xf32>, vector<32x128xf32> -> vector<32x128xf32>
    %c0_104 = arith.constant 0 : index
    %c0_105 = arith.constant 0 : index
    %196 = vector.load %arg29[%c0_104, %c0_105] : memref<1x128xf32, #tpu.memory_space<vmem>>, vector<1x128xf32>
    %197 = vector.broadcast %196 : vector<1x128xf32> to vector<32x128xf32>
    %198 = arith.addf %195, %197 : vector<32x128xf32>
    %cst_106 = arith.constant 0.000000e+00 : f32
    %199 = vector.broadcast %cst_106 : f32 to vector<32x128xf32>
    %200 = arith.maximumf %198, %199 : vector<32x128xf32>
    %c0_107 = arith.constant 0 : index
    %c0_108 = arith.constant 0 : index
    %201 = vector.load %arg30[%c0_107, %c0_108] : memref<1x128xf32, #tpu.memory_space<vmem>>, vector<1x128xf32>
    %c0_109 = arith.constant 0 : index
    %c0_110 = arith.constant 0 : index
    %202 = vector.load %arg31[%c0_109, %c0_110] : memref<1x128xf32, #tpu.memory_space<vmem>>, vector<1x128xf32>
    %cst_111 = arith.constant dense<0.000000e+00> : vector<128xf32>
    %203 = vector.multi_reduction <add>, %200, %cst_111 [0] : vector<32x128xf32> to vector<128xf32>
    %204 = vector.shape_cast %203 : vector<128xf32> to vector<1x128xf32>
    %cst_112 = arith.constant 3.200000e+01 : f32
    %205 = vector.broadcast %cst_112 : f32 to vector<1x128xf32>
    %206 = arith.divf %204, %205 : vector<1x128xf32>
    %207 = vector.broadcast %206 : vector<1x128xf32> to vector<32x128xf32>
    %208 = arith.subf %200, %207 : vector<32x128xf32>
    %209 = arith.mulf %208, %208 : vector<32x128xf32>
    %cst_113 = arith.constant dense<0.000000e+00> : vector<128xf32>
    %210 = vector.multi_reduction <add>, %209, %cst_113 [0] : vector<32x128xf32> to vector<128xf32>
    %211 = vector.shape_cast %210 : vector<128xf32> to vector<1x128xf32>
    %cst_114 = arith.constant 3.200000e+01 : f32
    %212 = vector.broadcast %cst_114 : f32 to vector<1x128xf32>
    %213 = arith.divf %211, %212 : vector<1x128xf32>
    %214 = vector.broadcast %206 : vector<1x128xf32> to vector<32x128xf32>
    %215 = arith.subf %200, %214 : vector<32x128xf32>
    %cst_115 = arith.constant 9.99999974E-6 : f32
    %216 = vector.broadcast %cst_115 : f32 to vector<1x128xf32>
    %217 = arith.addf %213, %216 : vector<1x128xf32>
    %218 = math.rsqrt %217 : vector<1x128xf32>
    %219 = vector.broadcast %218 : vector<1x128xf32> to vector<32x128xf32>
    %220 = arith.mulf %215, %219 : vector<32x128xf32>
    %221 = vector.broadcast %201 : vector<1x128xf32> to vector<32x128xf32>
    %222 = arith.mulf %220, %221 : vector<32x128xf32>
    %223 = vector.broadcast %202 : vector<1x128xf32> to vector<32x128xf32>
    %224 = arith.addf %222, %223 : vector<32x128xf32>
    %c0_116 = arith.constant 0 : index
    %c0_117 = arith.constant 0 : index
    %225 = vector.load %arg32[%c0_116, %c0_117] : memref<128x128xf32, #tpu.memory_space<vmem>>, vector<128x128xf32>
    %cst_118 = arith.constant dense<0.000000e+00> : vector<32x128xf32>
    %226 = tpu.matmul %224, %225, %cst_118 {dimension_numbers = #tpu.dot_dimension_numbers<[1], [0], [0], [1], [0, 0, 1, 1], [], []>} : vector<32x128xf32>, vector<128x128xf32>, vector<32x128xf32> -> vector<32x128xf32>
    %c0_119 = arith.constant 0 : index
    %c0_120 = arith.constant 0 : index
    %227 = vector.load %arg33[%c0_119, %c0_120] : memref<1x128xf32, #tpu.memory_space<vmem>>, vector<1x128xf32>
    %228 = vector.broadcast %227 : vector<1x128xf32> to vector<32x128xf32>
    %229 = arith.addf %226, %228 : vector<32x128xf32>
    %cst_121 = arith.constant 0.000000e+00 : f32
    %230 = vector.broadcast %cst_121 : f32 to vector<32x128xf32>
    %231 = arith.maximumf %229, %230 : vector<32x128xf32>
    %c0_122 = arith.constant 0 : index
    %c0_123 = arith.constant 0 : index
    %232 = vector.load %arg34[%c0_122, %c0_123] : memref<1x128xf32, #tpu.memory_space<vmem>>, vector<1x128xf32>
    %c0_124 = arith.constant 0 : index
    %c0_125 = arith.constant 0 : index
    %233 = vector.load %arg35[%c0_124, %c0_125] : memref<1x128xf32, #tpu.memory_space<vmem>>, vector<1x128xf32>
    %cst_126 = arith.constant dense<0.000000e+00> : vector<128xf32>
    %234 = vector.multi_reduction <add>, %231, %cst_126 [0] : vector<32x128xf32> to vector<128xf32>
    %235 = vector.shape_cast %234 : vector<128xf32> to vector<1x128xf32>
    %cst_127 = arith.constant 3.200000e+01 : f32
    %236 = vector.broadcast %cst_127 : f32 to vector<1x128xf32>
    %237 = arith.divf %235, %236 : vector<1x128xf32>
    %238 = vector.broadcast %237 : vector<1x128xf32> to vector<32x128xf32>
    %239 = arith.subf %231, %238 : vector<32x128xf32>
    %240 = arith.mulf %239, %239 : vector<32x128xf32>
    %cst_128 = arith.constant dense<0.000000e+00> : vector<128xf32>
    %241 = vector.multi_reduction <add>, %240, %cst_128 [0] : vector<32x128xf32> to vector<128xf32>
    %242 = vector.shape_cast %241 : vector<128xf32> to vector<1x128xf32>
    %cst_129 = arith.constant 3.200000e+01 : f32
    %243 = vector.broadcast %cst_129 : f32 to vector<1x128xf32>
    %244 = arith.divf %242, %243 : vector<1x128xf32>
    %245 = vector.broadcast %237 : vector<1x128xf32> to vector<32x128xf32>
    %246 = arith.subf %231, %245 : vector<32x128xf32>
    %cst_130 = arith.constant 9.99999974E-6 : f32
    %247 = vector.broadcast %cst_130 : f32 to vector<1x128xf32>
    %248 = arith.addf %244, %247 : vector<1x128xf32>
    %249 = math.rsqrt %248 : vector<1x128xf32>
    %250 = vector.broadcast %249 : vector<1x128xf32> to vector<32x128xf32>
    %251 = arith.mulf %246, %250 : vector<32x128xf32>
    %252 = vector.broadcast %232 : vector<1x128xf32> to vector<32x128xf32>
    %253 = arith.mulf %251, %252 : vector<32x128xf32>
    %254 = vector.broadcast %233 : vector<1x128xf32> to vector<32x128xf32>
    %255 = arith.addf %253, %254 : vector<32x128xf32>
    %c0_131 = arith.constant 0 : index
    %c0_132 = arith.constant 0 : index
    %256 = vector.load %arg36[%c0_131, %c0_132] : memref<128x128xf32, #tpu.memory_space<vmem>>, vector<128x128xf32>
    %cst_133 = arith.constant dense<0.000000e+00> : vector<32x128xf32>
    %257 = tpu.matmul %255, %256, %cst_133 {dimension_numbers = #tpu.dot_dimension_numbers<[1], [0], [0], [1], [0, 0, 1, 1], [], []>} : vector<32x128xf32>, vector<128x128xf32>, vector<32x128xf32> -> vector<32x128xf32>
    %c0_134 = arith.constant 0 : index
    %c0_135 = arith.constant 0 : index
    %258 = vector.load %arg37[%c0_134, %c0_135] : memref<1x128xf32, #tpu.memory_space<vmem>>, vector<1x128xf32>
    %259 = vector.broadcast %258 : vector<1x128xf32> to vector<32x128xf32>
    %260 = arith.addf %257, %259 : vector<32x128xf32>
    %cst_136 = arith.constant dense<0.000000e+00> : vector<16x128xf32>
    %261 = tpu.matmul %2, %260, %cst_136 {dimension_numbers = #tpu.dot_dimension_numbers<[1], [0], [0], [1], [0, 0, 1, 1], [], []>} : vector<16x32xf32>, vector<32x128xf32>, vector<16x128xf32> -> vector<16x128xf32>
    %c0_137 = arith.constant 0 : index
    %c0_138 = arith.constant 0 : index
    %262 = vector.load %arg38[%c0_137, %c0_138] : memref<16x128xf32, #tpu.memory_space<vmem>>, vector<16x128xf32>
    tpu.vector_store %arg38[%c0_137, %c0_138], %261 {strides = array<i32>} : memref<16x128xf32, #tpu.memory_space<vmem>>, vector<16x128xf32>,
    return
  }
}

</mosaic_0001>

<bundles_post_ra>
// kernel: forward_pallas.1
= control target key start
LH: loop header
LB: loop body
LE: loop exit
PB: predicated region body
PF: predicated region fallthrough
CT: control target
= control target key end

     0   :  { %s3567_s6 = smov 1   ;;  %s3568_s10 = smov 2   ;;  %s3935_s0 = inlined_call_operand.smem [shape: u32[39], index: -1, kind: input, shape index: {}] }
   0x1   :  { %s3629_s5 = sld [smem:[%s3935_s0]]   ;;  %s3569_s14 = smov 3  }
   0x2   :  { %s3634_s9 = sld [smem:[%s3935_s0 + %s3567_s6]]   ;;  %s3570_s18 = smov 4  }
   0x3   :  { %s3639_s13 = sld [smem:[%s3935_s0 + %s3568_s10]]   ;;  %s3571_s22 = smov 5  }
   0x4   :  { %s3644_s17 = sld [smem:[%s3935_s0 + %s3569_s14]]   ;;  %s3572_s26 = smov 6  }
   0x5   :  { %s3649_s21 = sld [smem:[%s3935_s0 + %s3570_s18]]   ;;  %s3573_s30 = smov 7  }
   0x6   :  { %s3654_s25 = sld [smem:[%s3935_s0 + %s3571_s22]]   ;;  %s3574_s4 = smov 8  }
   0x7   :  { %s3659_s29 = sld [smem:[%s3935_s0 + %s3572_s26]]   ;;  %s3575_s10 = smov 9  }
   0x8   :  { %s3664_s3 = sld [smem:[%s3935_s0 + %s3573_s30]]   ;;  %s3576_s15 = smov 10  }
   0x9   :  { %s3669_s8 = sld [smem:[%s3935_s0 + %s3574_s4]]   ;;  %s3577_s20 = smov 11  }
   0xa   :  { %s3674_s14 = sld [smem:[%s3935_s0 + %s3575_s10]]   ;;  %s3578_s26 = smov 12  }
   0xb   :  { %s3679_s19 = sld [smem:[%s3935_s0 + %s3576_s15]]   ;;  %s3579_s1 = smov 13  }
   0xc   :  { %3936 = sst [smem:[#allocation32_spill]] %s3654_s25  ;;  %s3580_s7 = smov 14  }
   0xd   :  { %s3684_s24 = sld [smem:[%s3935_s0 + %s3577_s20]]   ;;  %s3581_s15 = smov 15  }
   0xe   :  { %s3689_s30 = sld [smem:[%s3935_s0 + %s3578_s26]]   ;;  %s3582_s22 = smov 16  }
   0xf   :  { %3937 = sst [smem:[#allocation33_spill]] %s3669_s8  ;;  %s3583_s28 = smov 17  }
  0x10   :  { %3938 = sst [smem:[#allocation34_spill]] %s3674_s14 }
  0x11   :  { %3939 = sst [smem:[#allocation35_spill]] %s3679_s19 }
  0x12   :  { %s3694_s6 = sld [smem:[%s3935_s0 + %s3579_s1]]  }
  0x13   :  { %s3699_s12 = sld [smem:[%s3935_s0 + %s3580_s7]]   ;;  %s3584_s7 = smov 18  }
  0x14   :  { %3940 = sst [smem:[#allocation36_spill]] %s3689_s30 }
  0x15   :  { %s3704_s20 = sld [smem:[%s3935_s0 + %s3581_s15]]   ;;  %s3585_s15 = smov 19  }
  0x16   :  { %s3709_s27 = sld [smem:[%s3935_s0 + %s3582_s22]]   ;;  %s3586_s22 = smov 20  }
  0x17   :  { %s3714_s4 = sld [smem:[%s3935_s0 + %s3583_s28]]   ;;  %s3587_s28 = smov 21  }
  0x18   :  { %3941 = sst [smem:[#allocation37_spill]] %s3694_s6 }
  0x19   :  { %3942 = sst [smem:[#allocation38_spill]] %s3699_s12 }
  0x1a   :  { %s3719_s12 = sld [smem:[%s3935_s0 + %s3584_s7]]   ;;  %s3588_s7 = smov 22  }
  0x1b   :  { %s3724_s6 = sld [smem:[%s3935_s0 + %s3585_s15]]   ;;  %s3589_s15 = smov 23  }
  0x1c   :  { %3943 = sst [smem:[#allocation39_spill]] %s3709_s27 }
  0x1d   :  { %3944 = sst [smem:[#allocation40_spill]] %s3714_s4 }
  0x1e   :  { %s3729_s27 = sld [smem:[%s3935_s0 + %s3586_s22]]   ;;  %s3590_s22 = smov 24  }
  0x1f   :  { %s3734_s4 = sld [smem:[%s3935_s0 + %s3587_s28]]   ;;  %s3591_s28 = smov 25  }
  0x20   :  { %3945 = sst [smem:[#allocation41_spill]] %s3719_s12 }
  0x21   :  { %s3739_s12 = sld [smem:[%s3935_s0 + %s3588_s7]]   ;;  %s3592_s7 = smov 26  }
  0x22   :  { %s3744_s30 = sld [smem:[%s3935_s0 + %s3589_s15]]   ;;  %s3593_s15 = smov 27  }
  0x23   :  { %s3764_s19 = sld [smem:[%s3935_s0 + %s3593_s15]]   ;;  %s3597_s15 = smov 31  }
  0x24   :  { %3946 = sst [smem:[#allocation42_spill]] %s3729_s27 }
  0x25   :  { %3947 = sst [smem:[#allocation43_spill]] %s3734_s4 }
  0x26   :  { %s3749_s27 = sld [smem:[%s3935_s0 + %s3590_s22]]   ;;  %s3594_s22 = smov 28  }
  0x27   :  { %3948 = sst [smem:[#allocation44_spill]] %s3739_s12 }
  0x28   :  { %s3754_s4 = sld [smem:[%s3935_s0 + %s3591_s28]]   ;;  %s3595_s28 = smov 29  }
  0x29   :  { %s3759_s12 = sld [smem:[%s3935_s0 + %s3592_s7]]   ;;  %s3596_s7 = smov 30  }
  0x2a   :  { %3951 = sst [smem:[#allocation47_spill]] %s3764_s19 }
  0x2b   :  { %s3769_s14 = sld [smem:[%s3935_s0 + %s3594_s22]]   ;;  %s3598_s22 = smov 32  }
  0x2c   :  { %s3784_s19 = sld [smem:[%s3935_s0 + %s3597_s15]]   ;;  %s3601_s15 = smov 35  }
  0x2d   :  { %s3789_s8 = sld [smem:[%s3935_s0 + %s3598_s22]]   ;;  %s3602_s22 = smov 36  }
  0x2e   :  { %3949 = sst [smem:[#allocation45_spill]] %s3754_s4 }
  0x2f   :  { %3950 = sst [smem:[#allocation46_spill]] %s3759_s12 }
  0x30   :  { %s3774_s4 = sld [smem:[%s3935_s0 + %s3595_s28]]   ;;  %s3599_s28 = smov 33  }
  0x31   :  { %s3779_s12 = sld [smem:[%s3935_s0 + %s3596_s7]]   ;;  %s3600_s7 = smov 34  }
  0x32   :  { %3954 = sst [smem:[#allocation50_spill]] %s3784_s19 }
  0x33   :  { %s3804_s19 = sld [smem:[%s3935_s0 + %s3601_s15]]  }
  0x34   :  { %s3809_s25 = sld [smem:[%s3935_s0 + %s3602_s22]]  }
  0x36   :  { %3952 = sst [smem:[#allocation48_spill]] %s3774_s4 }
  0x37   :  { %3953 = sst [smem:[#allocation49_spill]] %s3779_s12 }
  0x38   :  { %s3794_s4 = sld [smem:[%s3935_s0 + %s3599_s28]]   ;;  %s3603_s28 = smov 37  }
  0x39   :  { %s3799_s12 = sld [smem:[%s3935_s0 + %s3600_s7]]   ;;  %s3604_s7 = smov 38  }
  0x3e   :  { %3955 = sst [smem:[#allocation51_spill]] %s3794_s4 }
  0x3f   :  { %3956 = sst [smem:[#allocation52_spill]] %s3799_s12 }
  0x40   :  { %s3814_s4 = sld [smem:[%s3935_s0 + %s3603_s28]]  }
  0x41   :  { %s3819_s12 = sld [smem:[%s3935_s0 + %s3604_s7]]  }
  0x42   :  { %82 = vsyncpa [#allocation3], 0 }
  0x43   :  { %83 = vsyncpa [#allocation5], 0 }
  0x44   :  { %84 = vsyncpa [#allocation8], 0 }
  0x45   :  { %85 = vsyncpa [#allocation11], 0 }
  0x46   :  { %86 = vsyncpa [#allocation14], 0 }
  0x47   :  { %87 = vsyncpa [#allocation17], 0 }
  0x48   :  { %88 = vsyncpa [#allocation20], 0 }
  0x49   :  { %89 = vsyncpa [#allocation23], 0  ;;  %s3605_s15 = smov [#allocation4]   ;;  %s3606_s18 = smov [#allocation7]  }
  0x4a   :  { %s107_s16 = sshll.u32 %s3605_s15, 4  ;;  %s131_s22 = sshll.u32 %s3606_s18, 4  ;;  %s108_s16 = int_to_ptr.vmem [resolvable:$true] %s107_s16  ;;  %s132_s22 = int_to_ptr.vmem [resolvable:$true] %s131_s22 }
  0x4b   :  { %s3279_s23 = scalar_lea.vmem %s108_s16, 512  ;;  %p3284_p1 = scmp.lt.s32.totalorder %s108_s16, %s108_s16 }
  0x4c   :  { %p3280_p0 = scmp.ne.s32.totalorder %s108_s16, %s3279_s23  ;;  %p3285_p2 = scmp.lt.s32.totalorder %s3279_s23, %s3279_s23 }
  0x4e   :  { %p3286_p3 = por %p3285_p2, %p3284_p1 }
  0x50   :  { %p3287_p4 = pnand %p3286_p3, %p3280_p0 }
  0x52   :  { %3290 = shalt.err (!%p3287_p4)
}
  0x53   :  { %s3607_s0 = smov 128   ;;  %s3608_s26 = smov 8  }
  0x54   :  { %113 = dma.hbm_to_vmem [thread:$0]  %s3634_s9, 512, %s108_s16, [#allocation5], %s3607_s0, %s3607_s0, %s3608_s26  }
  0x55   :  { %s3299_s28 = scalar_lea.vmem %s132_s22, 256  ;;  %p3304_p6 = scmp.lt.s32.totalorder %s132_s22, %s132_s22 }
  0x56   :  { %p3300_p5 = scmp.ne.s32.totalorder %s132_s22, %s3299_s28  ;;  %p3305_p7 = scmp.lt.s32.totalorder %s3299_s28, %s3299_s28 }
  0x58   :  { %p3306_p8 = por %p3305_p7, %p3304_p6 }
  0x5a   :  { %p3307_p9 = pnand %p3306_p8, %p3300_p5 }
  0x5c   :  { %3310 = shalt.err (!%p3307_p9)
}
  0x5d   :  { %137 = dma.hbm_to_vmem [thread:$0]  %s3644_s17, 256, %s132_s22, [#allocation8], %s3607_s0, %s3607_s0, %s3608_s26  }
  0x5e   :  { %s3609_s1 = smov [#allocation10]   ;;  %s3610_s7 = smov [#allocation13]  }
  0x5f   :  { %s159_s2 = sshll.u32 %s3609_s1, 4  ;;  %s195_s10 = sshll.u32 %s3610_s7, 4  ;;  %s160_s2 = int_to_ptr.vmem [resolvable:$true] %s159_s2  ;;  %s196_s10 = int_to_ptr.vmem [resolvable:$true] %s195_s10 }
  0x60   :  { %s3319_s11 = scalar_lea.vmem %s160_s2, 2048  ;;  %p3324_p11 = scmp.lt.s32.totalorder %s160_s2, %s160_s2 }
  0x61   :  { %p3320_p10 = scmp.ne.s32.totalorder %s160_s2, %s3319_s11  ;;  %p3325_p12 = scmp.lt.s32.totalorder %s3319_s11, %s3319_s11 }
  0x63   :  { %p3326_p13 = por %p3325_p12, %p3324_p11 }
  0x65   :  { %p3327_p0 = pnand %p3326_p13, %p3320_p10 }
  0x67   :  { %3330 = shalt.err (!%p3327_p0)
}
  0x68   :  { %165 = dma.hbm_to_vmem [thread:$0]  %s3664_s3, 2048, %s160_s2, [#allocation11], %s3607_s0, %s3607_s0, %s3608_s26  }
  0x69   :  { %s3339_s9 = scalar_lea.vmem %s196_s10, 2048  ;;  %p3344_p2 = scmp.lt.s32.totalorder %s196_s10, %s196_s10 }
  0x6a   :  { %p3340_p1 = scmp.ne.s32.totalorder %s196_s10, %s3339_s9  ;;  %p3345_p3 = scmp.lt.s32.totalorder %s3339_s9, %s3339_s9 }
  0x6c   :  { %p3346_p4 = por %p3345_p3, %p3344_p2 }
  0x6e   :  { %p3347_p5 = pnand %p3346_p4, %p3340_p1 }
  0x70   :  { %3350 = shalt.err (!%p3347_p5)
}
  0x71   :  { %201 = dma.hbm_to_vmem [thread:$0]  %s3704_s20, 2048, %s196_s10, [#allocation14], %s3607_s0, %s3607_s0, %s3608_s26  }
  0x72   :  { %s3611_s17 = smov [#allocation16]   ;;  %s3612_s16 = smov [#allocation19]  }
  0x73   :  { %s231_s15 = sshll.u32 %s3611_s17, 4  ;;  %s261_s18 = sshll.u32 %s3612_s16, 4  ;;  %s232_s15 = int_to_ptr.vmem [resolvable:$true] %s231_s15  ;;  %s262_s18 = int_to_ptr.vmem [resolvable:$true] %s261_s18 }
  0x74   :  { %s3359_s22 = scalar_lea.vmem %s232_s15, 2048  ;;  %p3364_p7 = scmp.lt.s32.totalorder %s232_s15, %s232_s15 }
  0x75   :  { %p3360_p6 = scmp.ne.s32.totalorder %s232_s15, %s3359_s22  ;;  %p3365_p8 = scmp.lt.s32.totalorder %s3359_s22, %s3359_s22 }
  0x77   :  { %p3366_p9 = por %p3365_p8, %p3364_p7 }
  0x79   :  { %p3367_p10 = pnand %p3366_p9, %p3360_p6 }
  0x7b   :  { %3370 = shalt.err (!%p3367_p10)
}
  0x7c   :  { %237 = dma.hbm_to_vmem [thread:$0]  %s3744_s30, 2048, %s232_s15, [#allocation17], %s3607_s0, %s3607_s0, %s3608_s26  }
  0x7d   :  { %s3379_s3 = scalar_lea.vmem %s262_s18, 2048  ;;  %p3384_p12 = scmp.lt.s32.totalorder %s262_s18, %s262_s18 }
  0x7e   :  { %p3380_p11 = scmp.ne.s32.totalorder %s262_s18, %s3379_s3  ;;  %p3385_p13 = scmp.lt.s32.totalorder %s3379_s3, %s3379_s3 }
  0x80   :  { %p3386_p0 = por %p3385_p13, %p3384_p12 }
  0x82   :  { %p3387_p1 = pnand %p3386_p0, %p3380_p11 }
  0x84   :  { %3390 = shalt.err (!%p3387_p1)
}
  0x85   :  { %267 = dma.hbm_to_vmem [thread:$0]  %s3769_s14, 2048, %s262_s18, [#allocation20], %s3607_s0, %s3607_s0, %s3608_s26  }
  0x86   :  { %s3613_s20 = smov [#allocation2]   ;;  %s3614_s28 = smov [#allocation6]  }
  0x87   :  { %s95_s23 = sshll.u32 %s3613_s20, 4  ;;  %s119_s1 = sshll.u32 %s3614_s28, 4  ;;  %s96_s23 = int_to_ptr.vmem [resolvable:$true] %s95_s23  ;;  %s120_s1 = int_to_ptr.vmem [resolvable:$true] %s119_s1 }
  0x88   :  { %s3399_s2 = scalar_lea.vmem %s96_s23, 512  ;;  %p3404_p3 = scmp.lt.s32.totalorder %s96_s23, %s96_s23 }
  0x89   :  { %p3400_p2 = scmp.ne.s32.totalorder %s96_s23, %s3399_s2  ;;  %p3405_p4 = scmp.lt.s32.totalorder %s3399_s2, %s3399_s2 }
  0x8b   :  { %p3406_p5 = por %p3405_p4, %p3404_p3 }
  0x8d   :  { %p3407_p6 = pnand %p3406_p5, %p3400_p2 }
  0x8f   :  { %3410 = shalt.err (!%p3407_p6)
}
  0x90   :  { %101 = dma.hbm_to_vmem [thread:$0]  %s3629_s5, 512, %s96_s23, [#allocation3], %s3607_s0, %s3607_s0, %s3608_s26  }
  0x91   :  { %s3419_s30 = scalar_lea.vmem %s120_s1, 256  ;;  %p3424_p8 = scmp.lt.s32.totalorder %s120_s1, %s120_s1 }
  0x92   :  { %p3420_p7 = scmp.ne.s32.totalorder %s120_s1, %s3419_s30  ;;  %p3425_p9 = scmp.lt.s32.totalorder %s3419_s30, %s3419_s30 }
  0x94   :  { %p3426_p10 = por %p3425_p9, %p3424_p8 }
  0x96   :  { %p3427_p11 = pnand %p3426_p10, %p3420_p7 }
  0x98   :  { %3430 = shalt.err (!%p3427_p11)
}
  0x99   :  { %125 = dma.hbm_to_vmem [thread:$0]  %s3639_s13, 256, %s120_s1, [#allocation5], %s3607_s0, %s3607_s0, %s3608_s26  }
  0x9a   :  { %s3615_s14 = smov [#allocation9]   ;;  %s3616_s10 = smov [#allocation12]  }
  0x9b   :  { %s147_s7 = sshll.u32 %s3615_s14, 4  ;;  %s177_s11 = sshll.u32 %s3616_s10, 4  ;;  %s148_s7 = int_to_ptr.vmem [resolvable:$true] %s147_s7  ;;  %s178_s11 = int_to_ptr.vmem [resolvable:$true] %s177_s11 }
  0x9c   :  { %s3439_s9 = scalar_lea.vmem %s148_s7, 2048  ;;  %p3444_p13 = scmp.lt.s32.totalorder %s148_s7, %s148_s7 }
  0x9d   :  { %p3440_p12 = scmp.ne.s32.totalorder %s148_s7, %s3439_s9  ;;  %p3445_p0 = scmp.lt.s32.totalorder %s3439_s9, %s3439_s9 }
  0x9f   :  { %p3446_p1 = por %p3445_p0, %p3444_p13 }
  0xa1   :  { %p3447_p2 = pnand %p3446_p1, %p3440_p12 }
  0xa3   :  { %3450 = shalt.err (!%p3447_p2)
}
  0xa4   :  { %153 = dma.hbm_to_vmem [thread:$0]  %s3659_s29, 2048, %s148_s7, [#allocation8], %s3607_s0, %s3607_s0, %s3608_s26  }
  0xa5   :  { %s3459_s5 = scalar_lea.vmem %s178_s11, 2048  ;;  %p3464_p4 = scmp.lt.s32.totalorder %s178_s11, %s178_s11 }
  0xa6   :  { %p3460_p3 = scmp.ne.s32.totalorder %s178_s11, %s3459_s5  ;;  %p3465_p5 = scmp.lt.s32.totalorder %s3459_s5, %s3459_s5 }
  0xa8   :  { %p3466_p6 = por %p3465_p5, %p3464_p4 }
  0xaa   :  { %p3467_p7 = pnand %p3466_p6, %p3460_p3 }
  0xac   :  { %3470 = shalt.err (!%p3467_p7)
}
  0xad   :  { %183 = dma.hbm_to_vmem [thread:$0]  %s3684_s24, 2048, %s178_s11, [#allocation11], %s3607_s0, %s3607_s0, %s3608_s26  }
  0xae   :  { %s3617_s13 = smov [#allocation15]   ;;  %s3618_s15 = smov [#allocation18]  }
  0xaf   :  { %s213_s17 = sshll.u32 %s3617_s13, 4  ;;  %s243_s16 = sshll.u32 %s3618_s15, 4  ;;  %s214_s17 = int_to_ptr.vmem [resolvable:$true] %s213_s17  ;;  %s244_s16 = int_to_ptr.vmem [resolvable:$true] %s243_s16 }
  0xb0   :  { %s3479_s18 = scalar_lea.vmem %s214_s17, 2048  ;;  %p3484_p9 = scmp.lt.s32.totalorder %s214_s17, %s214_s17 }
  0xb1   :  { %p3480_p8 = scmp.ne.s32.totalorder %s214_s17, %s3479_s18  ;;  %p3485_p10 = scmp.lt.s32.totalorder %s3479_s18, %s3479_s18 }
  0xb3   :  { %p3486_p11 = por %p3485_p10, %p3484_p9 }
  0xb5   :  { %p3487_p12 = pnand %p3486_p11, %p3480_p8 }
  0xb7   :  { %3490 = shalt.err (!%p3487_p12)
}
  0xb8   :  { %219 = dma.hbm_to_vmem [thread:$0]  %s3724_s6, 2048, %s214_s17, [#allocation14], %s3607_s0, %s3607_s0, %s3608_s26  }
  0xb9   :  { %s3499_s29 = scalar_lea.vmem %s244_s16, 2048  ;;  %p3504_p0 = scmp.lt.s32.totalorder %s244_s16, %s244_s16 }
  0xba   :  { %p3500_p13 = scmp.ne.s32.totalorder %s244_s16, %s3499_s29  ;;  %p3505_p1 = scmp.lt.s32.totalorder %s3499_s29, %s3499_s29 }
  0xbc   :  { %p3506_p2 = por %p3505_p1, %p3504_p0 }
  0xbe   :  { %p3507_p3 = pnand %p3506_p2, %p3500_p13 }
  0xc0   :  { %3510 = shalt.err (!%p3507_p3)
}
  0xc1   :  { %249 = dma.hbm_to_vmem [thread:$0]  %s3749_s27, 2048, %s244_s16, [#allocation17], %s3607_s0, %s3607_s0, %s3608_s26  }
  0xc2   :  { %s3619_s24 = smov [#allocation21]   ;;  %s3620_s3 = smov [#allocation22]  }
  0xc3   :  { %s279_s22 = sshll.u32 %s3619_s24, 4  ;;  %s297_s20 = sshll.u32 %s3620_s3, 4  ;;  %s280_s22 = int_to_ptr.vmem [resolvable:$true] %s279_s22  ;;  %s298_s20 = int_to_ptr.vmem [resolvable:$true] %s297_s20 }
  0xc4   :  { %s3519_s23 = scalar_lea.vmem %s280_s22, 2048  ;;  %p3524_p5 = scmp.lt.s32.totalorder %s280_s22, %s280_s22 }
  0xc5   :  { %p3520_p4 = scmp.ne.s32.totalorder %s280_s22, %s3519_s23  ;;  %p3525_p6 = scmp.lt.s32.totalorder %s3519_s23, %s3519_s23 }
  0xc7   :  { %p3526_p7 = por %p3525_p6, %p3524_p5 }
  0xc9   :  { %p3527_p8 = pnand %p3526_p7, %p3520_p4 }
  0xcb   :  { %3530 = shalt.err (!%p3527_p8)
}
  0xcc   :  { %285 = dma.hbm_to_vmem [thread:$0]  %s3789_s8, 2048, %s280_s22, [#allocation20], %s3607_s0, %s3607_s0, %s3608_s26  }
  0xcd   :  { %s3539_s6 = scalar_lea.vmem %s298_s20, 2048  ;;  %p3544_p10 = scmp.lt.s32.totalorder %s298_s20, %s298_s20 }
  0xce   :  { %p3540_p9 = scmp.ne.s32.totalorder %s298_s20, %s3539_s6  ;;  %p3545_p11 = scmp.lt.s32.totalorder %s3539_s6, %s3539_s6 }
  0xd0   :  { %p3546_p12 = por %p3545_p11, %p3544_p10 }
  0xd2   :  { %p3547_p13 = pnand %p3546_p12, %p3540_p9 }
  0xd4   :  { %3550 = shalt.err (!%p3547_p13)
}
  0xd5   :  { %303 = dma.hbm_to_vmem [thread:$0]  %s3809_s25, 2048, %s298_s20, [#allocation23], %s3607_s0, %s3607_s0, %s3608_s26  }
  0xd6   :  { %3551 = dma.done.wait [#allocation3], 512  }
  0xd7   :  { %3552 = vsyncadd [#allocation3], 4294966784 }
  0xd8   :  { %3553 = dma.done.wait [#allocation5], 768  }
  0xd9   :  { %3554 = vsyncadd [#allocation5], 4294966528 }
  0xda   :  { %3555 = dma.done.wait [#allocation8], 2304  }
  0xdb   :  { %3556 = vsyncadd [#allocation8], 4294964992 }
  0xdc   :  { %3557 = dma.done.wait [#allocation11], 4096  }
  0xdd   :  { %3558 = vsyncadd [#allocation11], 4294963200 }
  0xde   :  { %3559 = dma.done.wait [#allocation14], 4096  }
  0xdf   :  { %3560 = vsyncadd [#allocation14], 4294963200 }
  0xe0   :  { %3561 = dma.done.wait [#allocation17], 4096  }
  0xe1   :  { %3562 = vsyncadd [#allocation17], 4294963200 }
  0xe2   :  { %3563 = dma.done.wait [#allocation20], 4096  }
  0xe3   :  { %3564 = vsyncadd [#allocation20], 4294963200 }
  0xe4   :  { %3565 = dma.done.wait [#allocation23], 2048  }
  0xe5   :  { %3566 = vsyncadd [#allocation23], 4294965248  ;;  %vm403_vm0 = vcmask 130048   ;;  %v358_v0 = vld [vmem:[#allocation7] sm:$0xff]  ;;  %v359_v1 = vld [vmem:[#allocation7 + $0x8] sm:$0xff]  ;;  %s3957_s25 = sld [smem:[#allocation32_spill]] }
  0xe6   :  { %v362_v2 = vadd.f32 %v359_v1, %v358_v0  ;;  %v3877_v3 = vld [vmem:[#allocation2] sm:$0xff]  ;;  %v349_v34 = vld [vmem:[#allocation2 + $0x8] sm:$0xff]  ;;  %v350_v36 = vld [vmem:[#allocation2 + $0x10] sm:$0xff]  ;;  %s3959_s8 = sld [smem:[#allocation34_spill]]  ;;  %vm1376_vm1 = vcmask 261120  }
  0xe7   :  { %v352_v4 = vld [vmem:[#allocation4] sm:$0xff]  ;;  %2756 = vmatprep.mubr.msk.f32.mxu0 %vm403_vm0, %v3877_v3  ;;  %v353_v35 = vld [vmem:[#allocation4 + $0x8] sm:$0xff]  ;;  %v354_v37 = vld [vmem:[#allocation4 + $0x10] sm:$0xff]  ;;  %s3960_s27 = sld [smem:[#allocation35_spill]] }
  0xe8   :  { %2766 = vmatprep.mubr.msk.f32.mxu1 %vm403_vm0, %v352_v4  ;;  %v363_v5 = vrot.slane %v362_v2, 4  ;;  %v2472_v26 = vld [vmem:[%s3649_s21] ss:$0 sm:$0xff]  ;;  %v629_v38 = vld [vmem:[#allocation10 + $0x78] sm:$0xff]  ;;  %v628_v42 = vld [vmem:[#allocation10 + $0x70] sm:$0xff]  ;;  %s3958_s21 = sld [smem:[#allocation33_spill]] }
  0xe9   :  { %v613_v39 = vld [vmem:[#allocation9 + $0x78] sm:$0xff]  ;;  %v612_v43 = vld [vmem:[#allocation9 + $0x70] sm:$0xff]  ;;  %v627_v44 = vld [vmem:[#allocation10 + $0x68] sm:$0xff]  ;;  %s3961_s0 = sld [smem:[#allocation36_spill]] }
  0xea   :  { %v364_v6 = vadd.f32 %v363_v5, %v362_v2  ;;  %v351_v40 = vld [vmem:[#allocation2 + $0x18] sm:$0xff]  ;;  %v611_v45 = vld [vmem:[#allocation9 + $0x68] sm:$0xff]  ;;  %v626_v46 = vld [vmem:[#allocation10 + $0x60] sm:$0xff]  ;;  %s3962_s26 = sld [smem:[#allocation37_spill]] }
  0xeb   :  { %v2473_v29 = vld [vmem:[%s3957_s25] ss:$0 sm:$0xff]  ;;  %v355_v41 = vld [vmem:[#allocation4 + $0x18] sm:$0xff]  ;;  %v624_v50 = vld [vmem:[#allocation10 + $0x50] sm:$0xff]  ;;  %s3963_s28 = sld [smem:[#allocation38_spill]] }
  0xec   :  { %v365_v7 = vrot.slane %v364_v6, 2  ;;  %v610_v47 = vld [vmem:[#allocation9 + $0x60] sm:$0xff]  ;;  %v625_v48 = vld [vmem:[#allocation10 + $0x58] sm:$0xff]  ;;  %v608_v51 = vld [vmem:[#allocation9 + $0x50] sm:$0xff]  ;;  %s3964_s1 = sld [smem:[#allocation39_spill]] }
  0xed   :  { %v609_v49 = vld [vmem:[#allocation9 + $0x58] sm:$0xff]  ;;  %v623_v52 = vld [vmem:[#allocation10 + $0x48] sm:$0xff]  ;;  %v622_v54 = vld [vmem:[#allocation10 + $0x40] sm:$0xff]  ;;  %s3965_s2 = sld [smem:[#allocation40_spill]] }
  0xee   :  { %v366_v8 = vadd.f32 %v365_v7, %v364_v6  ;;  %v607_v53 = vld [vmem:[#allocation9 + $0x48] sm:$0xff]  ;;  %v606_v55 = vld [vmem:[#allocation9 + $0x40] sm:$0xff]  ;;  %v621_v56 = vld [vmem:[#allocation10 + $0x38] sm:$0xff]  ;;  %s3966_s30 = sld [smem:[#allocation41_spill]] }
  0xef   :  { %v605_v57 = vld [vmem:[#allocation9 + $0x38] sm:$0xff]  ;;  %v620_v58 = vld [vmem:[#allocation10 + $0x30] sm:$0xff]  ;;  %v619_v60 = vld [vmem:[#allocation10 + $0x28] sm:$0xff]  ;;  %s3967_s14 = sld [smem:[#allocation42_spill]] }
  0xf0   :  { %v367_v9 = vrot.slane %v366_v8, 1  ;;  %v604_v59 = vld [vmem:[#allocation9 + $0x30] sm:$0xff]  ;;  %v603_v61 = vld [vmem:[#allocation9 + $0x28] sm:$0xff]  ;;  %v618_v62 = vld [vmem:[#allocation10 + $0x20] sm:$0xff]  ;;  %s3968_s7 = sld [smem:[#allocation43_spill]] }
  0xf1   :  { %v602_v63 = vld [vmem:[#allocation9 + $0x20] sm:$0xff]  ;;  %v616_v2 = vld [vmem:[#allocation10 + $0x10] sm:$0xff]  ;;  %v615_v5 = vld [vmem:[#allocation10 + $0x8] sm:$0xff]  ;;  %s3969_s10 = sld [smem:[#allocation44_spill]] }
  0xf2   :  { %v368_v10 = vadd.f32 %v367_v9, %v366_v8  ;;  %v600_v4 = vld [vmem:[#allocation9 + $0x10] sm:$0xff]  ;;  %v599_v6 = vld [vmem:[#allocation9 + $0x8] sm:$0xff]  ;;  %v614_v7 = vld [vmem:[#allocation10] sm:$0xff]  ;;  %s3970_s11 = sld [smem:[#allocation45_spill]] }
  0xf3   :  { %v598_v8 = vld [vmem:[#allocation9] sm:$0xff]  ;;  %s3971_s9 = sld [smem:[#allocation46_spill]] }
  0xf4   :  { %v370_v11 = vmul.f32 0.0625, %v368_v10  ;;  %s3972_s5 = sld [smem:[#allocation47_spill]] }
  0xf5   :  { %s3973_s13 = sld [smem:[#allocation48_spill]] }
  0xf6   :  { %v371_v12 = vsub.f32 %v358_v0, %v370_v11  ;;  %v372_v13 = vsub.f32 %v359_v1, %v370_v11  ;;  %v617_v0 = vld [vmem:[#allocation10 + $0x18] sm:$0xff]  ;;  %s3974_s17 = sld [smem:[#allocation49_spill]] }
  0xf7   :  { %v601_v1 = vld [vmem:[#allocation9 + $0x18] sm:$0xff]  ;;  %s3975_s15 = sld [smem:[#allocation50_spill]] }
  0xf8   :  { %v373_v14 = vmul.f32 %v371_v12, %v371_v12  ;;  %v374_v15 = vmul.f32 %v372_v13, %v372_v13  ;;  %s3976_s16 = sld [smem:[#allocation51_spill]] }
  0xf9   :  { %s3977_s18 = sld [smem:[#allocation52_spill]] }
  0xfa   :  { %v375_v16 = vadd.f32 %v374_v15, %v373_v14 }
  0xfc   :  { %v376_v17 = vrot.slane %v375_v16, 4 }
  0xfe   :  { %v377_v18 = vadd.f32 %v376_v17, %v375_v16  ;;  %v887_v17 = vld [vmem:[#allocation12 + $0x78] sm:$0xff] }
 0x100   :  { %v378_v19 = vrot.slane %v377_v18, 2 }
 0x102   :  { %v379_v20 = vadd.f32 %v378_v19, %v377_v18  ;;  %v886_v18 = vld [vmem:[#allocation12 + $0x70] sm:$0xff]  ;;  %v885_v19 = vld [vmem:[#allocation12 + $0x68] sm:$0xff] }
 0x104   :  { %v380_v21 = vrot.slane %v379_v20, 1 }
 0x106   :  { %v381_v22 = vadd.f32 %v380_v21, %v379_v20  ;;  %v884_v20 = vld [vmem:[#allocation12 + $0x60] sm:$0xff]  ;;  %v883_v21 = vld [vmem:[#allocation12 + $0x58] sm:$0xff] }
 0x108   :  { %v382_v23 = vmul.f32 0.0625, %v381_v22  ;;  %v882_v22 = vld [vmem:[#allocation12 + $0x50] sm:$0xff] }
 0x10a   :  { %v383_v24 = vadd.f32 1e-05, %v382_v23  ;;  %v881_v23 = vld [vmem:[#allocation12 + $0x48] sm:$0xff] }
 0x10c   :  { %3248 = vrsqrt.f32 %v383_v24  ;;  %v880_v24 = vld [vmem:[#allocation12 + $0x40] sm:$0xff] }
 0x119   :  { %v3249_v25 = vpop.eup %3248 }
 0x11a   :  { %v386_v27 = vmul.f32 %v3249_v25, %v372_v13  ;;  %v385_v28 = vmul.f32 %v3249_v25, %v371_v12  ;;  %v879_v25 = vld [vmem:[#allocation12 + $0x38] sm:$0xff] }
 0x11c   :  { %v394_v30 = vmul.f32 %v2472_v26, %v386_v27  ;;  %v393_v31 = vmul.f32 %v2472_v26, %v385_v28  ;;  %v878_v26 = vld [vmem:[#allocation12 + $0x30] sm:$0xff]  ;;  %v877_v27 = vld [vmem:[#allocation12 + $0x28] sm:$0xff]  ;;  %v876_v28 = vld [vmem:[#allocation12 + $0x20] sm:$0xff] }
 0x11e   :  { %v402_v32 = vadd.f32 %v2473_v29, %v394_v30  ;;  %v401_v33 = vadd.f32 %v2473_v29, %v393_v31  ;;  %v875_v29 = vld [vmem:[#allocation12 + $0x18] sm:$0xff]  ;;  %v874_v30 = vld [vmem:[#allocation12 + $0x10] sm:$0xff]  ;;  %v873_v31 = vld [vmem:[#allocation12 + $0x8] sm:$0xff] }
 0x120   :  { %2752 = vmatprep.subr.mxu0 %v402_v32  ;;  %2762 = vmatprep.subr.mxu1 %v402_v32 }
 0x121   :  { %2753 = vmatpush3.msra.mxu0 %v402_v32  ;;  %2763 = vmatpush3.msra.mxu1 %v402_v32  ;;  %v872_v32 = vld [vmem:[#allocation12] sm:$0xff] }
 0x122   :  { %2754 = vmatprep.subr.mxu0 %v401_v33  ;;  %2764 = vmatprep.subr.mxu1 %v401_v33 }
 0x123   :  { %2755 = vmatpush3.msra.mxu0 %v401_v33  ;;  %2765 = vmatpush3.msra.mxu1 %v401_v33 }
 0x124   :  { %2757 = vmatmul.mubr.msk.f32.vlgmr.msra.gmra.mxu0 %vm403_vm0, %v349_v34  ;;  %2767 = vmatmul.mubr.msk.f32.vlgmr.msra.gmra.mxu1 %vm403_vm0, %v353_v35 }
 0x125   :  { %2759 = vmatprep.mubr.msk.f32.mxu0 %vm403_vm0, %v350_v36  ;;  %2769 = vmatprep.mubr.msk.f32.mxu1 %vm403_vm0, %v354_v37  ;;  %v2482_v36 = vld [vmem:[%s3958_s21] ss:$0 sm:$0xff] }
 0x126   :  { %2772 = vmatprep.subr.mxu0 %v629_v38  ;;  %2810 = vmatprep.subr.mxu1 %v613_v39 }
 0x127   :  { %2773 = vmatpush3.msra.mxu0 %v629_v38  ;;  %2811 = vmatpush3.msra.mxu1 %v613_v39 }
 0x128   :  { %2760 = vmatmul.mubr.msk.f32.gmra.mxu0 %vm403_vm0, %v351_v40  ;;  %2770 = vmatmul.mubr.msk.f32.gmra.mxu1 %vm403_vm0, %v355_v41 }
 0x129   :  { %2774 = vmatprep.subr.mxu0 %v628_v42  ;;  %2812 = vmatprep.subr.mxu1 %v612_v43 }
 0x12a   :  { %2775 = vmatpush3.msra.mxu0 %v628_v42  ;;  %2813 = vmatpush3.msra.mxu1 %v612_v43 }
 0x12b   :  { %2776 = vmatprep.subr.mxu0 %v627_v44  ;;  %2814 = vmatprep.subr.mxu1 %v611_v45 }
 0x12c   :  { %2777 = vmatpush3.msra.mxu0 %v627_v44  ;;  %2815 = vmatpush3.msra.mxu1 %v611_v45 }
 0x12d   :  { %2778 = vmatprep.subr.mxu0 %v626_v46  ;;  %2816 = vmatprep.subr.mxu1 %v610_v47 }
 0x12e   :  { %2779 = vmatpush3.msra.mxu0 %v626_v46  ;;  %2817 = vmatpush3.msra.mxu1 %v610_v47 }
 0x12f   :  { %2780 = vmatprep.subr.mxu0 %v625_v48  ;;  %2818 = vmatprep.subr.mxu1 %v609_v49 }
 0x130   :  { %2781 = vmatpush3.msra.mxu0 %v625_v48  ;;  %2819 = vmatpush3.msra.mxu1 %v609_v49 }
 0x131   :  { %2782 = vmatprep.subr.mxu0 %v624_v50  ;;  %2820 = vmatprep.subr.mxu1 %v608_v51 }
 0x132   :  { %2783 = vmatpush3.msra.mxu0 %v624_v50  ;;  %2821 = vmatpush3.msra.mxu1 %v608_v51 }
 0x133   :  { %2784 = vmatprep.subr.mxu0 %v623_v52  ;;  %2822 = vmatprep.subr.mxu1 %v607_v53 }
 0x134   :  { %2785 = vmatpush3.msra.mxu0 %v623_v52  ;;  %2823 = vmatpush3.msra.mxu1 %v607_v53 }
 0x135   :  { %2786 = vmatprep.subr.mxu0 %v622_v54  ;;  %2824 = vmatprep.subr.mxu1 %v606_v55 }
 0x136   :  { %2787 = vmatpush3.msra.mxu0 %v622_v54  ;;  %2825 = vmatpush3.msra.mxu1 %v606_v55 }
 0x137   :  { %2788 = vmatprep.subr.mxu0 %v621_v56  ;;  %2826 = vmatprep.subr.mxu1 %v605_v57 }
 0x138   :  { %2789 = vmatpush3.msra.mxu0 %v621_v56  ;;  %2827 = vmatpush3.msra.mxu1 %v605_v57 }
 0x139   :  { %2790 = vmatprep.subr.mxu0 %v620_v58  ;;  %2828 = vmatprep.subr.mxu1 %v604_v59 }
 0x13a   :  { %2791 = vmatpush3.msra.mxu0 %v620_v58  ;;  %2829 = vmatpush3.msra.mxu1 %v604_v59 }
 0x13b   :  { %2792 = vmatprep.subr.mxu0 %v619_v60  ;;  %2830 = vmatprep.subr.mxu1 %v603_v61 }
 0x13c   :  { %2793 = vmatpush3.msra.mxu0 %v619_v60  ;;  %2831 = vmatpush3.msra.mxu1 %v603_v61 }
 0x13d   :  { %2794 = vmatprep.subr.mxu0 %v618_v62  ;;  %2832 = vmatprep.subr.mxu1 %v602_v63 }
 0x13e   :  { %2795 = vmatpush3.msra.mxu0 %v618_v62  ;;  %2833 = vmatpush3.msra.mxu1 %v602_v63 }
 0x13f   :  { %2796 = vmatprep.subr.mxu0 %v617_v0  ;;  %2834 = vmatprep.subr.mxu1 %v601_v1 }
 0x140   :  { %2797 = vmatpush3.msra.mxu0 %v617_v0  ;;  %2835 = vmatpush3.msra.mxu1 %v601_v1 }
 0x141   :  { %2798 = vmatprep.subr.mxu0 %v616_v2  ;;  %2836 = vmatprep.subr.mxu1 %v600_v4 }
 0x142   :  { %2799 = vmatpush3.msra.mxu0 %v616_v2  ;;  %2837 = vmatpush3.msra.mxu1 %v600_v4 }
 0x143   :  { %2800 = vmatprep.subr.mxu0 %v615_v5  ;;  %2838 = vmatprep.subr.mxu1 %v599_v6 }
 0x144   :  { %2801 = vmatpush3.msra.mxu0 %v615_v5  ;;  %2839 = vmatpush3.msra.mxu1 %v599_v6 }
 0x145   :  { %2802 = vmatprep.subr.mxu0 %v614_v7  ;;  %2840 = vmatprep.subr.mxu1 %v598_v8 }
 0x146   :  { %2803 = vmatpush3.msra.mxu0 %v614_v7  ;;  %2841 = vmatpush3.msra.mxu1 %v598_v8 }
 0x147   :  { %2848 = vmatprep.subr.mxu0 %v887_v17 }
 0x1e4   :  { %v2758_v9 = vpop.f32.mrf.mxu0  ;;  %v2768_v10 = vpop.f32.mrf.mxu1 }
 0x1e6   :  { %v482_v11 = vpop.f32.mrf.mxu0  ;;  %v579_v12 = vpop.f32.mrf.mxu1 }
 0x1e7   :  { %2804 = vmatprep.mubr.f32.mxu0 %v579_v12  ;;  %2842 = vmatprep.mubr.f32.mxu1 %v482_v11 }
 0x1e8   :  { %v2761_v13 = vpop.f32.mrf.mxu0  ;;  %v2771_v14 = vpop.f32.mrf.mxu1  ;;  %2805 = vmatmul.mubr.f32.vlgmr.msra.gmra.mxu0 %v2768_v10  ;;  %2843 = vmatmul.mubr.f32.vlgmr.msra.gmra.mxu1 %v2758_v9 }
 0x1e9   :  { %2849 = vmatpush3.msra.mxu0 %v887_v17 }
 0x1ea   :  { %v492_v15 = vpop.f32.mrf.mxu0  ;;  %v589_v16 = vpop.f32.mrf.mxu1  ;;  %2850 = vmatprep.subr.mxu0 %v886_v18 }
 0x1eb   :  { %2807 = vmatprep.mubr.f32.mxu0 %v589_v16  ;;  %2845 = vmatprep.mubr.f32.mxu1 %v492_v15 }
 0x1ec   :  { %2808 = vmatmul.mubr.f32.gmra.mxu0 %v2771_v14  ;;  %2846 = vmatmul.mubr.f32.gmra.mxu1 %v2761_v13 }
 0x1ed   :  { %2851 = vmatpush3.msra.mxu0 %v886_v18 }
 0x1ee   :  { %2852 = vmatprep.subr.mxu0 %v885_v19 }
 0x1ef   :  { %2853 = vmatpush3.msra.mxu0 %v885_v19 }
 0x1f0   :  { %2854 = vmatprep.subr.mxu0 %v884_v20 }
 0x1f1   :  { %2855 = vmatpush3.msra.mxu0 %v884_v20 }
 0x1f2   :  { %2856 = vmatprep.subr.mxu0 %v883_v21 }
 0x1f3   :  { %2857 = vmatpush3.msra.mxu0 %v883_v21  ;;  %v2483_v21 = vld [vmem:[%s3959_s8] ss:$0 sm:$0xff] }
 0x1f4   :  { %2858 = vmatprep.subr.mxu0 %v882_v22 }
 0x1f5   :  { %2859 = vmatpush3.msra.mxu0 %v882_v22 }
 0x1f6   :  { %2860 = vmatprep.subr.mxu0 %v881_v23 }
 0x1f7   :  { %2861 = vmatpush3.msra.mxu0 %v881_v23 }
 0x1f8   :  { %2862 = vmatprep.subr.mxu0 %v880_v24 }
 0x1f9   :  { %2863 = vmatpush3.msra.mxu0 %v880_v24 }
 0x1fa   :  { %2864 = vmatprep.subr.mxu0 %v879_v25 }
 0x1fb   :  { %2865 = vmatpush3.msra.mxu0 %v879_v25  ;;  %v2484_v25 = vld [vmem:[%s3960_s27] ss:$0 sm:$0xff] }
 0x1fc   :  { %2866 = vmatprep.subr.mxu0 %v878_v26 }
 0x1fd   :  { %2867 = vmatpush3.msra.mxu0 %v878_v26 }
 0x1fe   :  { %2868 = vmatprep.subr.mxu0 %v877_v27 }
 0x1ff   :  { %2869 = vmatpush3.msra.mxu0 %v877_v27 }
 0x200   :  { %2870 = vmatprep.subr.mxu0 %v876_v28 }
 0x201   :  { %2871 = vmatpush3.msra.mxu0 %v876_v28 }
 0x202   :  { %2872 = vmatprep.subr.mxu0 %v875_v29 }
 0x203   :  { %2873 = vmatpush3.msra.mxu0 %v875_v29 }
 0x204   :  { %2874 = vmatprep.subr.mxu0 %v874_v30 }
 0x205   :  { %2875 = vmatpush3.msra.mxu0 %v874_v30 }
 0x206   :  { %2876 = vmatprep.subr.mxu0 %v873_v31 }
 0x207   :  { %2877 = vmatpush3.msra.mxu0 %v873_v31 }
 0x208   :  { %2878 = vmatprep.subr.mxu0 %v872_v32 }
 0x209   :  { %2879 = vmatpush3.msra.mxu0 %v872_v32 }
 0x2a8   :  { %v2806_v33 = vpop.f32.mrf.mxu0  ;;  %v2844_v34 = vpop.f32.mrf.mxu1 }
 0x2a9   :  { %v787_v35 = vadd.f32 %v2844_v34, %v2806_v33 }
 0x2aa   :  { %v696_v37 = vpop.f32.mrf.mxu0  ;;  %v781_v38 = vpop.f32.mrf.mxu1 }
 0x2ab   :  { %v782_v39 = vadd.f32 %v781_v38, %v696_v37  ;;  %v808_v42 = vadd.f32 %v2482_v36, %v787_v35  ;;  %v1055_v35 = vld [vmem:[#allocation13 + $0x78] sm:$0xff]  ;;  %v1053_v37 = vld [vmem:[#allocation13 + $0x68] sm:$0xff]  ;;  %v1052_v38 = vld [vmem:[#allocation13 + $0x60] sm:$0xff] }
 0x2ac   :  { %v2809_v40 = vpop.f32.mrf.mxu0  ;;  %v2847_v41 = vpop.f32.mrf.mxu1  ;;  %2886 = vmatprep.subr.mxu1 %v1055_v35 }
 0x2ad   :  { %v807_v43 = vadd.f32 %v2482_v36, %v782_v39  ;;  %v797_v44 = vadd.f32 %v2847_v41, %v2809_v40  ;;  %v812_v49 = vmax.f32 %v808_v42, 0.0  ;;  %2887 = vmatpush3.msra.mxu1 %v1055_v35  ;;  %v1051_v39 = vld [vmem:[#allocation13 + $0x58] sm:$0xff]  ;;  %v1050_v40 = vld [vmem:[#allocation13 + $0x50] sm:$0xff]  ;;  %v1049_v41 = vld [vmem:[#allocation13 + $0x48] sm:$0xff] }
 0x2ae   :  { %v706_v45 = vpop.f32.mrf.mxu0  ;;  %v791_v46 = vpop.f32.mrf.mxu1  ;;  %v1048_v42 = vld [vmem:[#allocation13 + $0x40] sm:$0xff] }
 0x2af   :  { %v811_v47 = vmax.f32 %v807_v43, 0.0  ;;  %v792_v48 = vadd.f32 %v791_v46, %v706_v45  ;;  %v810_v50 = vadd.f32 %v2482_v36, %v797_v44  ;;  %v1047_v43 = vld [vmem:[#allocation13 + $0x38] sm:$0xff]  ;;  %v1046_v44 = vld [vmem:[#allocation13 + $0x30] sm:$0xff]  ;;  %v1045_v45 = vld [vmem:[#allocation13 + $0x28] sm:$0xff] }
 0x2b0   :  { %v1044_v46 = vld [vmem:[#allocation13 + $0x20] sm:$0xff] }
 0x2b1   :  { %v809_v51 = vadd.f32 %v2482_v36, %v792_v48  ;;  %v817_v52 = vadd.f32 %v812_v49, %v811_v47  ;;  %v814_v54 = vmax.f32 %v810_v50, 0.0  ;;  %v1054_v36 = vld [vmem:[#allocation13 + $0x70] sm:$0xff]  ;;  %v1040_v50 = vld [vmem:[#allocation13] sm:$0xff] }
 0x2b2   :  { %2888 = vmatprep.subr.mxu1 %v1054_v36  ;;  %v1042_v48 = vld [vmem:[#allocation13 + $0x10] sm:$0xff]  ;;  %v2487_v35 = vld [vmem:[%s3963_s28] ss:$0 sm:$0xff] }
 0x2b3   :  { %v813_v53 = vmax.f32 %v809_v51, 0.0  ;;  %2889 = vmatpush3.msra.mxu1 %v1054_v36 }
 0x2b4   :  { %2890 = vmatprep.subr.mxu1 %v1053_v37 }
 0x2b5   :  { %v818_v55 = vadd.f32 %v817_v52, %v813_v53  ;;  %2891 = vmatpush3.msra.mxu1 %v1053_v37  ;;  %v2485_v52 = vld [vmem:[%s3961_s0] ss:$0 sm:$0xff] }
 0x2b6   :  { %2892 = vmatprep.subr.mxu1 %v1052_v38 }
 0x2b7   :  { %v819_v56 = vadd.f32 %v818_v55, %v814_v54  ;;  %2893 = vmatpush3.msra.mxu1 %v1052_v38 }
 0x2b8   :  { %2894 = vmatprep.subr.mxu1 %v1051_v39 }
 0x2b9   :  { %v820_v57 = vrot.slane %v819_v56, 4  ;;  %2895 = vmatpush3.msra.mxu1 %v1051_v39 }
 0x2ba   :  { %2896 = vmatprep.subr.mxu1 %v1050_v40 }
 0x2bb   :  { %v821_v58 = vadd.f32 %v820_v57, %v819_v56  ;;  %2897 = vmatpush3.msra.mxu1 %v1050_v40 }
 0x2bc   :  { %2898 = vmatprep.subr.mxu1 %v1049_v41 }
 0x2bd   :  { %v822_v59 = vrot.slane %v821_v58, 2  ;;  %2899 = vmatpush3.msra.mxu1 %v1049_v41 }
 0x2be   :  { %2900 = vmatprep.subr.mxu1 %v1048_v42 }
 0x2bf   :  { %v823_v60 = vadd.f32 %v822_v59, %v821_v58  ;;  %2901 = vmatpush3.msra.mxu1 %v1048_v42 }
 0x2c0   :  { %2902 = vmatprep.subr.mxu1 %v1047_v43 }
 0x2c1   :  { %v824_v61 = vrot.slane %v823_v60, 1  ;;  %2903 = vmatpush3.msra.mxu1 %v1047_v43 }
 0x2c2   :  { %2904 = vmatprep.subr.mxu1 %v1046_v44 }
 0x2c3   :  { %v825_v62 = vadd.f32 %v824_v61, %v823_v60  ;;  %2905 = vmatpush3.msra.mxu1 %v1046_v44 }
 0x2c4   :  { %2906 = vmatprep.subr.mxu1 %v1045_v45 }
 0x2c5   :  { %v827_v63 = vmul.f32 0.03125, %v825_v62  ;;  %2907 = vmatpush3.msra.mxu1 %v1045_v45  ;;  %v1223_v45 = vld [vmem:[#allocation15 + $0x78] sm:$0xff] }
 0x2c6   :  { %2908 = vmatprep.subr.mxu1 %v1044_v46  ;;  %2924 = vmatprep.subr.mxu0 %v1223_v45 }
 0x2c7   :  { %v828_v0 = vsub.f32 %v811_v47, %v827_v63  ;;  %v829_v1 = vsub.f32 %v812_v49, %v827_v63  ;;  %v830_v2 = vsub.f32 %v813_v53, %v827_v63  ;;  %v831_v4 = vsub.f32 %v814_v54, %v827_v63  ;;  %2909 = vmatpush3.msra.mxu1 %v1044_v46  ;;  %v1043_v47 = vld [vmem:[#allocation13 + $0x18] sm:$0xff]  ;;  %v1041_v49 = vld [vmem:[#allocation13 + $0x8] sm:$0xff]  ;;  %v1222_v46 = vld [vmem:[#allocation15 + $0x70] sm:$0xff] }
 0x2c8   :  { %2910 = vmatprep.subr.mxu1 %v1043_v47 }
 0x2c9   :  { %v832_v5 = vmul.f32 %v828_v0, %v828_v0  ;;  %v833_v6 = vmul.f32 %v829_v1, %v829_v1  ;;  %v834_v7 = vmul.f32 %v830_v2, %v830_v2  ;;  %v835_v9 = vmul.f32 %v831_v4, %v831_v4  ;;  %2911 = vmatpush3.msra.mxu1 %v1043_v47  ;;  %v1221_v47 = vld [vmem:[#allocation15 + $0x68] sm:$0xff] }
 0x2ca   :  { %2912 = vmatprep.subr.mxu1 %v1042_v48 }
 0x2cb   :  { %v836_v8 = vadd.f32 %v833_v6, %v832_v5  ;;  %2913 = vmatpush3.msra.mxu1 %v1042_v48  ;;  %v1220_v48 = vld [vmem:[#allocation15 + $0x60] sm:$0xff] }
 0x2cc   :  { %2914 = vmatprep.subr.mxu1 %v1041_v49 }
 0x2cd   :  { %v837_v10 = vadd.f32 %v836_v8, %v834_v7  ;;  %2915 = vmatpush3.msra.mxu1 %v1041_v49  ;;  %v1219_v49 = vld [vmem:[#allocation15 + $0x58] sm:$0xff] }
 0x2ce   :  { %2916 = vmatprep.subr.mxu1 %v1040_v50 }
 0x2cf   :  { %v838_v11 = vadd.f32 %v837_v10, %v835_v9  ;;  %2917 = vmatpush3.msra.mxu1 %v1040_v50  ;;  %v1218_v50 = vld [vmem:[#allocation15 + $0x50] sm:$0xff] }
 0x2d1   :  { %v839_v12 = vrot.slane %v838_v11, 4 }
 0x2d3   :  { %v840_v13 = vadd.f32 %v839_v12, %v838_v11 }
 0x2d5   :  { %v841_v14 = vrot.slane %v840_v13, 2 }
 0x2d7   :  { %v842_v15 = vadd.f32 %v841_v14, %v840_v13 }
 0x2d9   :  { %v843_v16 = vrot.slane %v842_v15, 1 }
 0x2db   :  { %v844_v17 = vadd.f32 %v843_v16, %v842_v15 }
 0x2dd   :  { %v845_v18 = vmul.f32 0.03125, %v844_v17 }
 0x2df   :  { %v846_v19 = vadd.f32 1e-05, %v845_v18 }
 0x2e1   :  { %3250 = vrsqrt.f32 %v846_v19 }
 0x2ee   :  { %v3251_v20 = vpop.eup %3250 }
 0x2ef   :  { %v850_v22 = vmul.f32 %v3251_v20, %v830_v2  ;;  %v848_v23 = vmul.f32 %v3251_v20, %v828_v0  ;;  %v849_v24 = vmul.f32 %v3251_v20, %v829_v1  ;;  %v851_v26 = vmul.f32 %v3251_v20, %v831_v4 }
 0x2f1   :  { %v858_v27 = vmul.f32 %v2483_v21, %v848_v23  ;;  %v859_v28 = vmul.f32 %v2483_v21, %v849_v24  ;;  %v860_v29 = vmul.f32 %v2483_v21, %v850_v22  ;;  %v861_v32 = vmul.f32 %v2483_v21, %v851_v26 }
 0x2f3   :  { %v868_v30 = vadd.f32 %v2484_v25, %v858_v27  ;;  %v869_v31 = vadd.f32 %v2484_v25, %v859_v28  ;;  %v870_v33 = vadd.f32 %v2484_v25, %v860_v29  ;;  %v871_v34 = vadd.f32 %v2484_v25, %v861_v32 }
 0x2f5   :  { %2880 = vmatprep.mubr.f32.mxu0 %v868_v30 }
 0x2f6   :  { %2881 = vmatmul.mubr.f32.vlgmr.msra.gmra.mxu0 %v869_v31  ;;  %v2486_v31 = vld [vmem:[%s3962_s26] ss:$0 sm:$0xff] }
 0x2f7   :  { %2883 = vmatprep.mubr.f32.mxu0 %v870_v33  ;;  %2925 = vmatpush3.msra.mxu0 %v1223_v45  ;;  %v2490_v45 = vld [vmem:[%s3966_s30] ss:$0 sm:$0xff] }
 0x2f8   :  { %2926 = vmatprep.subr.mxu0 %v1222_v46 }
 0x2f9   :  { %2927 = vmatpush3.msra.mxu0 %v1222_v46 }
 0x2fa   :  { %2884 = vmatmul.mubr.f32.gmra.mxu0 %v871_v34  ;;  %2928 = vmatprep.subr.mxu0 %v1221_v47 }
 0x2fb   :  { %2929 = vmatpush3.msra.mxu0 %v1221_v47 }
 0x2fc   :  { %2930 = vmatprep.subr.mxu0 %v1220_v48 }
 0x2fd   :  { %2931 = vmatpush3.msra.mxu0 %v1220_v48 }
 0x2fe   :  { %2932 = vmatprep.subr.mxu0 %v1219_v49 }
 0x2ff   :  { %2933 = vmatpush3.msra.mxu0 %v1219_v49 }
 0x300   :  { %2934 = vmatprep.subr.mxu0 %v1218_v50 }
 0x301   :  { %2935 = vmatpush3.msra.mxu0 %v1218_v50 }
 0x3b6   :  { %v2882_v51 = vpop.f32.mrf.mxu0 }
 0x3b7   :  { %v967_v54 = vadd.f32 %v2882_v51, %v2485_v52  ;;  %v1217_v51 = vld [vmem:[#allocation15 + $0x48] sm:$0xff] }
 0x3b8   :  { %v961_v53 = vpop.f32.mrf.mxu0  ;;  %2936 = vmatprep.subr.mxu0 %v1217_v51 }
 0x3b9   :  { %v962_v55 = vadd.f32 %v2485_v52, %v961_v53  ;;  %v981_v59 = vmax.f32 %v967_v54, 0.0  ;;  %2937 = vmatpush3.msra.mxu0 %v1217_v51  ;;  %v1215_v53 = vld [vmem:[#allocation15 + $0x38] sm:$0xff]  ;;  %v1214_v54 = vld [vmem:[#allocation15 + $0x30] sm:$0xff] }
 0x3ba   :  { %v2885_v56 = vpop.f32.mrf.mxu0 }
 0x3bb   :  { %v980_v57 = vmax.f32 %v962_v55, 0.0  ;;  %v977_v60 = vadd.f32 %v2885_v56, %v2485_v52  ;;  %v1213_v55 = vld [vmem:[#allocation15 + $0x28] sm:$0xff]  ;;  %v1212_v56 = vld [vmem:[#allocation15 + $0x20] sm:$0xff] }
 0x3bc   :  { %v971_v58 = vpop.f32.mrf.mxu0 }
 0x3bd   :  { %v972_v61 = vadd.f32 %v2485_v52, %v971_v58  ;;  %v986_v62 = vadd.f32 %v981_v59, %v980_v57  ;;  %v983_v0 = vmax.f32 %v977_v60, 0.0  ;;  %v1216_v52 = vld [vmem:[#allocation15 + $0x40] sm:$0xff]  ;;  %v1210_v58 = vld [vmem:[#allocation15 + $0x10] sm:$0xff] }
 0x3be   :  { %2938 = vmatprep.subr.mxu0 %v1216_v52  ;;  %v1208_v60 = vld [vmem:[#allocation15] sm:$0xff] }
 0x3bf   :  { %v982_v63 = vmax.f32 %v972_v61, 0.0  ;;  %2939 = vmatpush3.msra.mxu0 %v1216_v52 }
 0x3c0   :  { %2940 = vmatprep.subr.mxu0 %v1215_v53 }
 0x3c1   :  { %v987_v1 = vadd.f32 %v986_v62, %v982_v63  ;;  %2941 = vmatpush3.msra.mxu0 %v1215_v53  ;;  %v2488_v62 = vld [vmem:[%s3964_s1] ss:$0 sm:$0xff] }
 0x3c2   :  { %2942 = vmatprep.subr.mxu0 %v1214_v54 }
 0x3c3   :  { %v988_v2 = vadd.f32 %v987_v1, %v983_v0  ;;  %2943 = vmatpush3.msra.mxu0 %v1214_v54 }
 0x3c4   :  { %2944 = vmatprep.subr.mxu0 %v1213_v55 }
 0x3c5   :  { %v989_v4 = vrot.slane %v988_v2, 4  ;;  %2945 = vmatpush3.msra.mxu0 %v1213_v55  ;;  %v3901_v55 = vld [vmem:[#allocation6] sm:$0xff] }
 0x3c6   :  { %2946 = vmatprep.subr.mxu0 %v1212_v56 }
 0x3c7   :  { %v990_v5 = vadd.f32 %v989_v4, %v988_v2  ;;  %2947 = vmatpush3.msra.mxu0 %v1212_v56 }
 0x3c9   :  { %v991_v6 = vrot.slane %v990_v5, 2 }
 0x3cb   :  { %v992_v7 = vadd.f32 %v991_v6, %v990_v5 }
 0x3cd   :  { %v993_v8 = vrot.slane %v992_v7, 1 }
 0x3cf   :  { %v994_v9 = vadd.f32 %v993_v8, %v992_v7 }
 0x3d1   :  { %v995_v10 = vmul.f32 0.03125, %v994_v9 }
 0x3d3   :  { %v996_v11 = vsub.f32 %v980_v57, %v995_v10  ;;  %v997_v12 = vsub.f32 %v981_v59, %v995_v10  ;;  %v998_v13 = vsub.f32 %v982_v63, %v995_v10  ;;  %v999_v14 = vsub.f32 %v983_v0, %v995_v10  ;;  %v1211_v57 = vld [vmem:[#allocation15 + $0x18] sm:$0xff]  ;;  %v1209_v59 = vld [vmem:[#allocation15 + $0x8] sm:$0xff] }
 0x3d4   :  { %2948 = vmatprep.subr.mxu0 %v1211_v57 }
 0x3d5   :  { %v1000_v15 = vmul.f32 %v996_v11, %v996_v11  ;;  %v1001_v16 = vmul.f32 %v997_v12, %v997_v12  ;;  %v1002_v17 = vmul.f32 %v998_v13, %v998_v13  ;;  %v1003_v19 = vmul.f32 %v999_v14, %v999_v14  ;;  %2949 = vmatpush3.msra.mxu0 %v1211_v57  ;;  %v2491_v57 = vld [vmem:[%s3967_s14] ss:$0 sm:$0xff] }
 0x3d6   :  { %2950 = vmatprep.subr.mxu0 %v1210_v58 }
 0x3d7   :  { %v1004_v18 = vadd.f32 %v1001_v16, %v1000_v15  ;;  %2951 = vmatpush3.msra.mxu0 %v1210_v58 }
 0x3d8   :  { %2952 = vmatprep.subr.mxu0 %v1209_v59 }
 0x3d9   :  { %v1005_v20 = vadd.f32 %v1004_v18, %v1002_v17  ;;  %2953 = vmatpush3.msra.mxu0 %v1209_v59 }
 0x3da   :  { %2954 = vmatprep.subr.mxu0 %v1208_v60 }
 0x3db   :  { %v1006_v21 = vadd.f32 %v1005_v20, %v1003_v19  ;;  %2955 = vmatpush3.msra.mxu0 %v1208_v60 }
 0x3dd   :  { %v1007_v22 = vrot.slane %v1006_v21, 4 }
 0x3df   :  { %v1008_v23 = vadd.f32 %v1007_v22, %v1006_v21 }
 0x3e1   :  { %v1009_v24 = vrot.slane %v1008_v23, 2 }
 0x3e3   :  { %v1010_v25 = vadd.f32 %v1009_v24, %v1008_v23 }
 0x3e5   :  { %v1011_v26 = vrot.slane %v1010_v25, 1 }
 0x3e7   :  { %v1012_v27 = vadd.f32 %v1011_v26, %v1010_v25 }
 0x3e9   :  { %v1013_v28 = vmul.f32 0.03125, %v1012_v27 }
 0x3eb   :  { %v1014_v29 = vadd.f32 1e-05, %v1013_v28 }
 0x3ed   :  { %3252 = vrsqrt.f32 %v1014_v29 }
 0x3fa   :  { %v3253_v30 = vpop.eup %3252 }
 0x3fb   :  { %v1017_v32 = vmul.f32 %v3253_v30, %v997_v12  ;;  %v1018_v33 = vmul.f32 %v3253_v30, %v998_v13  ;;  %v1016_v34 = vmul.f32 %v3253_v30, %v996_v11  ;;  %v1019_v36 = vmul.f32 %v3253_v30, %v999_v14 }
 0x3fd   :  { %v1026_v37 = vmul.f32 %v2486_v31, %v1016_v34  ;;  %v1027_v38 = vmul.f32 %v2486_v31, %v1017_v32  ;;  %v1028_v39 = vmul.f32 %v2486_v31, %v1018_v33  ;;  %v1029_v42 = vmul.f32 %v2486_v31, %v1019_v36 }
 0x3ff   :  { %v1036_v40 = vadd.f32 %v2487_v35, %v1026_v37  ;;  %v1037_v41 = vadd.f32 %v2487_v35, %v1027_v38  ;;  %v1038_v43 = vadd.f32 %v2487_v35, %v1028_v39  ;;  %v1039_v44 = vadd.f32 %v2487_v35, %v1029_v42 }
 0x401   :  { %2918 = vmatprep.mubr.f32.mxu1 %v1036_v40 }
 0x402   :  { %2919 = vmatmul.mubr.f32.vlgmr.msra.gmra.mxu1 %v1037_v41  ;;  %v2489_v41 = vld [vmem:[%s3965_s2] ss:$0 sm:$0xff] }
 0x403   :  { %2921 = vmatprep.mubr.f32.mxu1 %v1038_v43 }
 0x406   :  { %2922 = vmatmul.mubr.f32.gmra.mxu1 %v1039_v44 }
 0x407   :  { %2970 = vmatprep.mubr.msk.f32.mxu1 %vm1376_vm1, %v3901_v55 }
 0x4c2   :  { %v2920_v61 = vpop.f32.mrf.mxu1 }
 0x4c3   :  { %v1135_v0 = vadd.f32 %v2920_v61, %v2488_v62 }
 0x4c4   :  { %v1129_v63 = vpop.f32.mrf.mxu1 }
 0x4c5   :  { %v1130_v1 = vadd.f32 %v2488_v62, %v1129_v63  ;;  %v1149_v6 = vmax.f32 %v1135_v0, 0.0 }
 0x4c6   :  { %v2923_v2 = vpop.f32.mrf.mxu1 }
 0x4c7   :  { %v1148_v4 = vmax.f32 %v1130_v1, 0.0  ;;  %v1145_v7 = vadd.f32 %v2923_v2, %v2488_v62 }
 0x4c8   :  { %v1139_v5 = vpop.f32.mrf.mxu1 }
 0x4c9   :  { %v1140_v8 = vadd.f32 %v2488_v62, %v1139_v5  ;;  %v1154_v9 = vadd.f32 %v1149_v6, %v1148_v4  ;;  %v1151_v11 = vmax.f32 %v1145_v7, 0.0 }
 0x4cb   :  { %v1150_v10 = vmax.f32 %v1140_v8, 0.0 }
 0x4cd   :  { %v1155_v12 = vadd.f32 %v1154_v9, %v1150_v10 }
 0x4cf   :  { %v1156_v13 = vadd.f32 %v1155_v12, %v1151_v11 }
 0x4d1   :  { %v1157_v14 = vrot.slane %v1156_v13, 4 }
 0x4d3   :  { %v1158_v15 = vadd.f32 %v1157_v14, %v1156_v13 }
 0x4d5   :  { %v1159_v16 = vrot.slane %v1158_v15, 2 }
 0x4d7   :  { %v1160_v17 = vadd.f32 %v1159_v16, %v1158_v15 }
 0x4d9   :  { %v1161_v18 = vrot.slane %v1160_v17, 1 }
 0x4db   :  { %v1162_v19 = vadd.f32 %v1161_v18, %v1160_v17 }
 0x4dd   :  { %v1163_v20 = vmul.f32 0.03125, %v1162_v19 }
 0x4df   :  { %v1164_v21 = vsub.f32 %v1148_v4, %v1163_v20  ;;  %v1165_v22 = vsub.f32 %v1149_v6, %v1163_v20  ;;  %v1166_v23 = vsub.f32 %v1150_v10, %v1163_v20  ;;  %v1167_v24 = vsub.f32 %v1151_v11, %v1163_v20 }
 0x4e1   :  { %v1168_v25 = vmul.f32 %v1164_v21, %v1164_v21  ;;  %v1169_v26 = vmul.f32 %v1165_v22, %v1165_v22  ;;  %v1170_v27 = vmul.f32 %v1166_v23, %v1166_v23  ;;  %v1171_v29 = vmul.f32 %v1167_v24, %v1167_v24 }
 0x4e3   :  { %v1172_v28 = vadd.f32 %v1169_v26, %v1168_v25 }
 0x4e5   :  { %v1173_v30 = vadd.f32 %v1172_v28, %v1170_v27 }
 0x4e7   :  { %v1174_v31 = vadd.f32 %v1173_v30, %v1171_v29 }
 0x4e9   :  { %v1175_v32 = vrot.slane %v1174_v31, 4 }
 0x4eb   :  { %v1176_v33 = vadd.f32 %v1175_v32, %v1174_v31 }
 0x4ed   :  { %v1177_v34 = vrot.slane %v1176_v33, 2 }
 0x4ef   :  { %v1178_v35 = vadd.f32 %v1177_v34, %v1176_v33 }
 0x4f1   :  { %v1179_v36 = vrot.slane %v1178_v35, 1 }
 0x4f3   :  { %v1180_v37 = vadd.f32 %v1179_v36, %v1178_v35  ;;  %v2492_v35 = vld [vmem:[%s3968_s7] ss:$0 sm:$0xff] }
 0x4f5   :  { %v1181_v38 = vmul.f32 0.03125, %v1180_v37 }
 0x4f7   :  { %v1182_v39 = vadd.f32 1e-05, %v1181_v38 }
 0x4f9   :  { %3254 = vrsqrt.f32 %v1182_v39  ;;  %v2493_v39 = vld [vmem:[%s3969_s10] ss:$0 sm:$0xff] }
 0x506   :  { %v3255_v40 = vpop.eup %3254 }
 0x507   :  { %v1185_v42 = vmul.f32 %v3255_v40, %v1165_v22  ;;  %v1186_v43 = vmul.f32 %v3255_v40, %v1166_v23  ;;  %v1184_v44 = vmul.f32 %v3255_v40, %v1164_v21  ;;  %v1187_v46 = vmul.f32 %v3255_v40, %v1167_v24 }
 0x509   :  { %v1194_v47 = vmul.f32 %v2489_v41, %v1184_v44  ;;  %v1195_v48 = vmul.f32 %v2489_v41, %v1185_v42  ;;  %v1196_v49 = vmul.f32 %v2489_v41, %v1186_v43  ;;  %v1197_v52 = vmul.f32 %v2489_v41, %v1187_v46 }
 0x50b   :  { %v1204_v50 = vadd.f32 %v2490_v45, %v1194_v47  ;;  %v1205_v51 = vadd.f32 %v2490_v45, %v1195_v48  ;;  %v1206_v53 = vadd.f32 %v2490_v45, %v1196_v49  ;;  %v1207_v54 = vadd.f32 %v2490_v45, %v1197_v52  ;;  %v3908_v49 = vld [vmem:[#allocation6 + $0x8] sm:$0xff] }
 0x50d   :  { %2956 = vmatprep.mubr.f32.mxu0 %v1204_v50  ;;  %v3264_v50 = vld [vmem:[#allocation4] sm:$0xff] }
 0x50e   :  { %2957 = vmatmul.mubr.f32.vlgmr.msra.gmra.mxu0 %v1205_v51 }
 0x50f   :  { %2959 = vmatprep.mubr.f32.mxu0 %v1206_v53  ;;  %v1659_v53 = vld [vmem:[#allocation18 + $0x78] sm:$0xff] }
 0x512   :  { %2960 = vmatmul.mubr.f32.gmra.mxu0 %v1207_v54  ;;  %v1643_v54 = vld [vmem:[#allocation16 + $0x78] sm:$0xff] }
 0x513   :  { %2977 = vmatprep.mubr.msk.f32.mxu0 %vm403_vm0, %v3877_v3 }
 0x5ce   :  { %v2958_v56 = vpop.f32.mrf.mxu0 }
 0x5cf   :  { %v1303_v59 = vadd.f32 %v2958_v56, %v2491_v57  ;;  %v3265_v56 = vld [vmem:[#allocation2 + $0x8] sm:$0xff] }
 0x5d0   :  { %v1297_v58 = vpop.f32.mrf.mxu0 }
 0x5d1   :  { %v1298_v60 = vadd.f32 %v2491_v57, %v1297_v58  ;;  %v1317_v0 = vmax.f32 %v1303_v59, 0.0  ;;  %v3267_v58 = vld [vmem:[#allocation2 + $0x10] sm:$0xff] }
 0x5d2   :  { %v2961_v61 = vpop.f32.mrf.mxu0  ;;  %v3268_v59 = vld [vmem:[#allocation4 + $0x10] sm:$0xff] }
 0x5d3   :  { %v1316_v62 = vmax.f32 %v1298_v60, 0.0  ;;  %v1313_v1 = vadd.f32 %v2961_v61, %v2491_v57  ;;  %v1658_v60 = vld [vmem:[#allocation18 + $0x70] sm:$0xff] }
 0x5d4   :  { %v1307_v63 = vpop.f32.mrf.mxu0  ;;  %v1642_v61 = vld [vmem:[#allocation16 + $0x70] sm:$0xff] }
 0x5d5   :  { %v1308_v2 = vadd.f32 %v2491_v57, %v1307_v63  ;;  %v1322_v4 = vadd.f32 %v1317_v0, %v1316_v62  ;;  %v1319_v3 = vmax.f32 %v1313_v1, 0.0  ;;  %v3266_v57 = vld [vmem:[#allocation4 + $0x8] sm:$0xff]  ;;  %v3270_v63 = vld [vmem:[#allocation4 + $0x18] sm:$0xff] }
 0x5d6   :  { %v1641_v1 = vld [vmem:[#allocation16 + $0x68] sm:$0xff] }
 0x5d7   :  { %v1318_v5 = vmax.f32 %v1308_v2, 0.0  ;;  %v1656_v2 = vld [vmem:[#allocation18 + $0x60] sm:$0xff] }
 0x5d9   :  { %v1323_v6 = vadd.f32 %v1322_v4, %v1318_v5  ;;  %v1640_v4 = vld [vmem:[#allocation16 + $0x60] sm:$0xff] }
 0x5db   :  { %v1324_v7 = vadd.f32 %v1323_v6, %v1319_v3  ;;  %v1654_v6 = vld [vmem:[#allocation18 + $0x50] sm:$0xff] }
 0x5dd   :  { %v1325_v8 = vrot.slane %v1324_v7, 4 }
 0x5df   :  { %v1326_v9 = vadd.f32 %v1325_v8, %v1324_v7  ;;  %v1638_v7 = vld [vmem:[#allocation16 + $0x50] sm:$0xff]  ;;  %v1653_v8 = vld [vmem:[#allocation18 + $0x48] sm:$0xff] }
 0x5e1   :  { %v1327_v10 = vrot.slane %v1326_v9, 2 }
 0x5e3   :  { %v1328_v11 = vadd.f32 %v1327_v10, %v1326_v9  ;;  %v1637_v9 = vld [vmem:[#allocation16 + $0x48] sm:$0xff]  ;;  %v1652_v10 = vld [vmem:[#allocation18 + $0x40] sm:$0xff] }
 0x5e5   :  { %v1329_v12 = vrot.slane %v1328_v11, 1 }
 0x5e7   :  { %v1330_v13 = vadd.f32 %v1329_v12, %v1328_v11  ;;  %v1636_v11 = vld [vmem:[#allocation16 + $0x40] sm:$0xff]  ;;  %v1651_v12 = vld [vmem:[#allocation18 + $0x38] sm:$0xff] }
 0x5e9   :  { %v1331_v14 = vmul.f32 0.03125, %v1330_v13  ;;  %v1635_v13 = vld [vmem:[#allocation16 + $0x38] sm:$0xff] }
 0x5eb   :  { %v1332_v15 = vsub.f32 %v1316_v62, %v1331_v14  ;;  %v1333_v16 = vsub.f32 %v1317_v0, %v1331_v14  ;;  %v1334_v17 = vsub.f32 %v1318_v5, %v1331_v14  ;;  %v1335_v18 = vsub.f32 %v1319_v3, %v1331_v14  ;;  %v3269_v62 = vld [vmem:[#allocation2 + $0x18] sm:$0xff]  ;;  %v1657_v0 = vld [vmem:[#allocation18 + $0x68] sm:$0xff]  ;;  %v1650_v14 = vld [vmem:[#allocation18 + $0x30] sm:$0xff] }
 0x5ec   :  { %v1655_v5 = vld [vmem:[#allocation18 + $0x58] sm:$0xff] }
 0x5ed   :  { %v1336_v19 = vmul.f32 %v1332_v15, %v1332_v15  ;;  %v1337_v20 = vmul.f32 %v1333_v16, %v1333_v16  ;;  %v1338_v21 = vmul.f32 %v1334_v17, %v1334_v17  ;;  %v1339_v23 = vmul.f32 %v1335_v18, %v1335_v18  ;;  %v1639_v3 = vld [vmem:[#allocation16 + $0x58] sm:$0xff] }
 0x5ef   :  { %v1340_v22 = vadd.f32 %v1337_v20, %v1336_v19  ;;  %v1632_v19 = vld [vmem:[#allocation16 + $0x20] sm:$0xff]  ;;  %v1647_v20 = vld [vmem:[#allocation18 + $0x18] sm:$0xff] }
 0x5f1   :  { %v1341_v24 = vadd.f32 %v1340_v22, %v1338_v21  ;;  %v1631_v21 = vld [vmem:[#allocation16 + $0x18] sm:$0xff]  ;;  %v1646_v22 = vld [vmem:[#allocation18 + $0x10] sm:$0xff] }
 0x5f3   :  { %v1342_v25 = vadd.f32 %v1341_v24, %v1339_v23  ;;  %v1630_v23 = vld [vmem:[#allocation16 + $0x10] sm:$0xff]  ;;  %v1645_v24 = vld [vmem:[#allocation18 + $0x8] sm:$0xff] }
 0x5f5   :  { %v1343_v26 = vrot.slane %v1342_v25, 4 }
 0x5f7   :  { %v1344_v27 = vadd.f32 %v1343_v26, %v1342_v25  ;;  %v1629_v25 = vld [vmem:[#allocation16 + $0x8] sm:$0xff]  ;;  %v1644_v26 = vld [vmem:[#allocation18] sm:$0xff] }
 0x5f9   :  { %v1345_v28 = vrot.slane %v1344_v27, 2 }
 0x5fb   :  { %v1346_v29 = vadd.f32 %v1345_v28, %v1344_v27  ;;  %v1628_v27 = vld [vmem:[#allocation16] sm:$0xff] }
 0x5fd   :  { %v1347_v30 = vrot.slane %v1346_v29, 1 }
 0x5ff   :  { %v1348_v31 = vadd.f32 %v1347_v30, %v1346_v29 }
 0x601   :  { %v1349_v32 = vmul.f32 0.03125, %v1348_v31 }
 0x603   :  { %v1350_v33 = vadd.f32 1e-05, %v1349_v32 }
 0x605   :  { %3256 = vrsqrt.f32 %v1350_v33 }
 0x612   :  { %v3257_v34 = vpop.eup %3256 }
 0x613   :  { %v1354_v36 = vmul.f32 %v3257_v34, %v1334_v17  ;;  %v1355_v37 = vmul.f32 %v3257_v34, %v1335_v18  ;;  %v1353_v38 = vmul.f32 %v3257_v34, %v1333_v16  ;;  %v1352_v42 = vmul.f32 %v3257_v34, %v1332_v15  ;;  %v1634_v15 = vld [vmem:[#allocation16 + $0x30] sm:$0xff]  ;;  %v1649_v16 = vld [vmem:[#allocation18 + $0x28] sm:$0xff]  ;;  %v1648_v18 = vld [vmem:[#allocation18 + $0x20] sm:$0xff] }
 0x614   :  { %v1633_v17 = vld [vmem:[#allocation16 + $0x28] sm:$0xff] }
 0x615   :  { %v1365_v40 = vmul.f32 %v2492_v35, %v1355_v37  ;;  %v1364_v41 = vmul.f32 %v2492_v35, %v1354_v36  ;;  %v1363_v44 = vmul.f32 %v2492_v35, %v1353_v38  ;;  %v1362_v46 = vmul.f32 %v2492_v35, %v1352_v42  ;;  %v1916_v36 = vld [vmem:[#allocation19 + $0x78] sm:$0xff]  ;;  %v1915_v37 = vld [vmem:[#allocation19 + $0x70] sm:$0xff]  ;;  %v1914_v38 = vld [vmem:[#allocation19 + $0x68] sm:$0xff] }
 0x616   :  { %v1910_v42 = vld [vmem:[#allocation19 + $0x48] sm:$0xff] }
 0x617   :  { %v1375_v43 = vadd.f32 %v2493_v39, %v1365_v40  ;;  %v1374_v45 = vadd.f32 %v2493_v39, %v1364_v41  ;;  %v1373_v47 = vadd.f32 %v2493_v39, %v1363_v44  ;;  %v1372_v48 = vadd.f32 %v2493_v39, %v1362_v46  ;;  %v1913_v39 = vld [vmem:[#allocation19 + $0x60] sm:$0xff]  ;;  %v1912_v40 = vld [vmem:[#allocation19 + $0x58] sm:$0xff]  ;;  %v1911_v41 = vld [vmem:[#allocation19 + $0x50] sm:$0xff] }
 0x618   :  { %v1908_v44 = vld [vmem:[#allocation19 + $0x38] sm:$0xff]  ;;  %v1906_v46 = vld [vmem:[#allocation19 + $0x28] sm:$0xff] }
 0x619   :  { %2962 = vmatprep.subr.mxu1 %v1375_v43 }
 0x61a   :  { %2963 = vmatpush3.msra.mxu1 %v1375_v43  ;;  %v1909_v43 = vld [vmem:[#allocation19 + $0x40] sm:$0xff] }
 0x61b   :  { %2964 = vmatprep.subr.mxu1 %v1374_v45 }
 0x61c   :  { %2965 = vmatpush3.msra.mxu1 %v1374_v45  ;;  %v1907_v45 = vld [vmem:[#allocation19 + $0x30] sm:$0xff] }
 0x61d   :  { %2966 = vmatprep.subr.mxu1 %v1373_v47 }
 0x61e   :  { %2967 = vmatpush3.msra.mxu1 %v1373_v47  ;;  %v1905_v47 = vld [vmem:[#allocation19 + $0x20] sm:$0xff] }
 0x61f   :  { %2968 = vmatprep.subr.mxu1 %v1372_v48 }
 0x620   :  { %2969 = vmatpush3.msra.mxu1 %v1372_v48  ;;  %v1904_v48 = vld [vmem:[#allocation19 + $0x18] sm:$0xff] }
 0x621   :  { %2971 = vmatmul.mubr.msk.f32.vlgmr.msra.gmra.mxu1 %vm1376_vm1, %v3908_v49 }
 0x622   :  { %2987 = vmatprep.mubr.msk.f32.mxu1 %vm403_vm0, %v3264_v50  ;;  %v1903_v50 = vld [vmem:[#allocation19 + $0x10] sm:$0xff] }
 0x6e1   :  { %v2972_v51 = vpop.f32.mrf.mxu1 }
 0x6e2   :  { %2973 = vmatprep.subr.mxu0 %v2972_v51  ;;  %2983 = vmatprep.subr.mxu1 %v2972_v51 }
 0x6e3   :  { %v1449_v52 = vpop.f32.mrf.mxu1  ;;  %2974 = vmatpush3.msra.mxu0 %v2972_v51  ;;  %2984 = vmatpush3.msra.mxu1 %v2972_v51  ;;  %v1902_v51 = vld [vmem:[#allocation19 + $0x8] sm:$0xff] }
 0x6e4   :  { %2975 = vmatprep.subr.mxu0 %v1449_v52  ;;  %2985 = vmatprep.subr.mxu1 %v1449_v52 }
 0x6e5   :  { %2976 = vmatpush3.msra.mxu0 %v1449_v52  ;;  %2986 = vmatpush3.msra.mxu1 %v1449_v52  ;;  %v1901_v52 = vld [vmem:[#allocation19] sm:$0xff] }
 0x6e6   :  { %2978 = vmatmul.mubr.msk.f32.vlgmr.msra.gmra.mxu0 %vm403_vm0, %v3265_v56  ;;  %2988 = vmatmul.mubr.msk.f32.vlgmr.msra.gmra.mxu1 %vm403_vm0, %v3266_v57  ;;  %v2504_v57 = vld [vmem:[%s3970_s11] ss:$0 sm:$0xff] }
 0x6e7   :  { %2980 = vmatprep.mubr.msk.f32.mxu0 %vm403_vm0, %v3267_v58  ;;  %2990 = vmatprep.mubr.msk.f32.mxu1 %vm403_vm0, %v3268_v59 }
 0x6e8   :  { %2993 = vmatprep.subr.mxu1 %v1659_v53  ;;  %3031 = vmatprep.subr.mxu0 %v1643_v54 }
 0x6e9   :  { %2994 = vmatpush3.msra.mxu1 %v1659_v53  ;;  %3032 = vmatpush3.msra.mxu0 %v1643_v54 }
 0x6ea   :  { %2981 = vmatmul.mubr.msk.f32.gmra.mxu0 %vm403_vm0, %v3269_v62  ;;  %2991 = vmatmul.mubr.msk.f32.gmra.mxu1 %vm403_vm0, %v3270_v63 }
 0x6eb   :  { %2995 = vmatprep.subr.mxu1 %v1658_v60  ;;  %3033 = vmatprep.subr.mxu0 %v1642_v61 }
 0x6ec   :  { %2996 = vmatpush3.msra.mxu1 %v1658_v60  ;;  %3034 = vmatpush3.msra.mxu0 %v1642_v61 }
 0x6ed   :  { %2997 = vmatprep.subr.mxu1 %v1657_v0  ;;  %3035 = vmatprep.subr.mxu0 %v1641_v1 }
 0x6ee   :  { %2998 = vmatpush3.msra.mxu1 %v1657_v0  ;;  %3036 = vmatpush3.msra.mxu0 %v1641_v1 }
 0x6ef   :  { %2999 = vmatprep.subr.mxu1 %v1656_v2  ;;  %3037 = vmatprep.subr.mxu0 %v1640_v4 }
 0x6f0   :  { %3000 = vmatpush3.msra.mxu1 %v1656_v2  ;;  %3038 = vmatpush3.msra.mxu0 %v1640_v4 }
 0x6f1   :  { %3001 = vmatprep.subr.mxu1 %v1655_v5  ;;  %3039 = vmatprep.subr.mxu0 %v1639_v3 }
 0x6f2   :  { %3002 = vmatpush3.msra.mxu1 %v1655_v5  ;;  %3040 = vmatpush3.msra.mxu0 %v1639_v3 }
 0x6f3   :  { %3003 = vmatprep.subr.mxu1 %v1654_v6  ;;  %3041 = vmatprep.subr.mxu0 %v1638_v7 }
 0x6f4   :  { %3004 = vmatpush3.msra.mxu1 %v1654_v6  ;;  %3042 = vmatpush3.msra.mxu0 %v1638_v7 }
 0x6f5   :  { %3005 = vmatprep.subr.mxu1 %v1653_v8  ;;  %3043 = vmatprep.subr.mxu0 %v1637_v9 }
 0x6f6   :  { %3006 = vmatpush3.msra.mxu1 %v1653_v8  ;;  %3044 = vmatpush3.msra.mxu0 %v1637_v9 }
 0x6f7   :  { %3007 = vmatprep.subr.mxu1 %v1652_v10  ;;  %3045 = vmatprep.subr.mxu0 %v1636_v11 }
 0x6f8   :  { %3008 = vmatpush3.msra.mxu1 %v1652_v10  ;;  %3046 = vmatpush3.msra.mxu0 %v1636_v11 }
 0x6f9   :  { %3009 = vmatprep.subr.mxu1 %v1651_v12  ;;  %3047 = vmatprep.subr.mxu0 %v1635_v13 }
 0x6fa   :  { %3010 = vmatpush3.msra.mxu1 %v1651_v12  ;;  %3048 = vmatpush3.msra.mxu0 %v1635_v13 }
 0x6fb   :  { %3011 = vmatprep.subr.mxu1 %v1650_v14  ;;  %3049 = vmatprep.subr.mxu0 %v1634_v15 }
 0x6fc   :  { %3012 = vmatpush3.msra.mxu1 %v1650_v14  ;;  %3050 = vmatpush3.msra.mxu0 %v1634_v15 }
 0x6fd   :  { %3013 = vmatprep.subr.mxu1 %v1649_v16  ;;  %3051 = vmatprep.subr.mxu0 %v1633_v17 }
 0x6fe   :  { %3014 = vmatpush3.msra.mxu1 %v1649_v16  ;;  %3052 = vmatpush3.msra.mxu0 %v1633_v17 }
 0x6ff   :  { %3015 = vmatprep.subr.mxu1 %v1648_v18  ;;  %3053 = vmatprep.subr.mxu0 %v1632_v19 }
 0x700   :  { %3016 = vmatpush3.msra.mxu1 %v1648_v18  ;;  %3054 = vmatpush3.msra.mxu0 %v1632_v19 }
 0x701   :  { %3017 = vmatprep.subr.mxu1 %v1647_v20  ;;  %3055 = vmatprep.subr.mxu0 %v1631_v21 }
 0x702   :  { %3018 = vmatpush3.msra.mxu1 %v1647_v20  ;;  %3056 = vmatpush3.msra.mxu0 %v1631_v21 }
 0x703   :  { %3019 = vmatprep.subr.mxu1 %v1646_v22  ;;  %3057 = vmatprep.subr.mxu0 %v1630_v23 }
 0x704   :  { %3020 = vmatpush3.msra.mxu1 %v1646_v22  ;;  %3058 = vmatpush3.msra.mxu0 %v1630_v23 }
 0x705   :  { %3021 = vmatprep.subr.mxu1 %v1645_v24  ;;  %3059 = vmatprep.subr.mxu0 %v1629_v25 }
 0x706   :  { %3022 = vmatpush3.msra.mxu1 %v1645_v24  ;;  %3060 = vmatpush3.msra.mxu0 %v1629_v25 }
 0x707   :  { %3023 = vmatprep.subr.mxu1 %v1644_v26  ;;  %3061 = vmatprep.subr.mxu0 %v1628_v27 }
 0x708   :  { %3024 = vmatpush3.msra.mxu1 %v1644_v26  ;;  %3062 = vmatpush3.msra.mxu0 %v1628_v27 }
 0x709   :  { %3069 = vmatprep.subr.mxu1 %v1916_v36 }
 0x7a6   :  { %v2979_v28 = vpop.f32.mrf.mxu0  ;;  %v2989_v29 = vpop.f32.mrf.mxu1 }
 0x7a8   :  { %v1524_v30 = vpop.f32.mrf.mxu0  ;;  %v1609_v31 = vpop.f32.mrf.mxu1 }
 0x7a9   :  { %3025 = vmatprep.mubr.f32.mxu1 %v1609_v31  ;;  %3063 = vmatprep.mubr.f32.mxu0 %v1524_v30 }
 0x7aa   :  { %v2982_v32 = vpop.f32.mrf.mxu0  ;;  %v2992_v33 = vpop.f32.mrf.mxu1  ;;  %3026 = vmatmul.mubr.f32.vlgmr.msra.gmra.mxu1 %v2989_v29  ;;  %3064 = vmatmul.mubr.f32.vlgmr.msra.gmra.mxu0 %v2979_v28 }
 0x7ab   :  { %3070 = vmatpush3.msra.mxu1 %v1916_v36 }
 0x7ac   :  { %v1534_v34 = vpop.f32.mrf.mxu0  ;;  %v1619_v35 = vpop.f32.mrf.mxu1  ;;  %3071 = vmatprep.subr.mxu1 %v1915_v37 }
 0x7ad   :  { %3028 = vmatprep.mubr.f32.mxu1 %v1619_v35  ;;  %3066 = vmatprep.mubr.f32.mxu0 %v1534_v34 }
 0x7ae   :  { %3029 = vmatmul.mubr.f32.gmra.mxu1 %v2992_v33  ;;  %3067 = vmatmul.mubr.f32.gmra.mxu0 %v2982_v32 }
 0x7af   :  { %3072 = vmatpush3.msra.mxu1 %v1915_v37 }
 0x7b0   :  { %3073 = vmatprep.subr.mxu1 %v1914_v38 }
 0x7b1   :  { %3074 = vmatpush3.msra.mxu1 %v1914_v38 }
 0x7b2   :  { %3075 = vmatprep.subr.mxu1 %v1913_v39 }
 0x7b3   :  { %3076 = vmatpush3.msra.mxu1 %v1913_v39 }
 0x7b4   :  { %3077 = vmatprep.subr.mxu1 %v1912_v40 }
 0x7b5   :  { %3078 = vmatpush3.msra.mxu1 %v1912_v40 }
 0x7b6   :  { %3079 = vmatprep.subr.mxu1 %v1911_v41 }
 0x7b7   :  { %3080 = vmatpush3.msra.mxu1 %v1911_v41  ;;  %v2505_v41 = vld [vmem:[%s3971_s9] ss:$0 sm:$0xff] }
 0x7b8   :  { %3081 = vmatprep.subr.mxu1 %v1910_v42 }
 0x7b9   :  { %3082 = vmatpush3.msra.mxu1 %v1910_v42 }
 0x7ba   :  { %3083 = vmatprep.subr.mxu1 %v1909_v43 }
 0x7bb   :  { %3084 = vmatpush3.msra.mxu1 %v1909_v43 }
 0x7bc   :  { %3085 = vmatprep.subr.mxu1 %v1908_v44 }
 0x7bd   :  { %3086 = vmatpush3.msra.mxu1 %v1908_v44 }
 0x7be   :  { %3087 = vmatprep.subr.mxu1 %v1907_v45 }
 0x7bf   :  { %3088 = vmatpush3.msra.mxu1 %v1907_v45  ;;  %v2506_v45 = vld [vmem:[%s3972_s5] ss:$0 sm:$0xff] }
 0x7c0   :  { %3089 = vmatprep.subr.mxu1 %v1906_v46 }
 0x7c1   :  { %3090 = vmatpush3.msra.mxu1 %v1906_v46 }
 0x7c2   :  { %3091 = vmatprep.subr.mxu1 %v1905_v47 }
 0x7c3   :  { %3092 = vmatpush3.msra.mxu1 %v1905_v47 }
 0x7c4   :  { %3093 = vmatprep.subr.mxu1 %v1904_v48 }
 0x7c5   :  { %3094 = vmatpush3.msra.mxu1 %v1904_v48 }
 0x7c6   :  { %3095 = vmatprep.subr.mxu1 %v1903_v50 }
 0x7c7   :  { %3096 = vmatpush3.msra.mxu1 %v1903_v50 }
 0x7c8   :  { %3097 = vmatprep.subr.mxu1 %v1902_v51 }
 0x7c9   :  { %3098 = vmatpush3.msra.mxu1 %v1902_v51 }
 0x7ca   :  { %3099 = vmatprep.subr.mxu1 %v1901_v52 }
 0x7cb   :  { %3100 = vmatpush3.msra.mxu1 %v1901_v52 }
 0x86a   :  { %v3027_v53 = vpop.f32.mrf.mxu1  ;;  %v3065_v54 = vpop.f32.mrf.mxu0 }
 0x86b   :  { %v1817_v56 = vadd.f32 %v3065_v54, %v3027_v53 }
 0x86c   :  { %v1726_v58 = vpop.f32.mrf.mxu1  ;;  %v1811_v59 = vpop.f32.mrf.mxu0 }
 0x86d   :  { %v1812_v60 = vadd.f32 %v1811_v59, %v1726_v58  ;;  %v1838_v63 = vadd.f32 %v2504_v57, %v1817_v56  ;;  %v2083_v58 = vld [vmem:[#allocation21 + $0x70] sm:$0xff]  ;;  %v2082_v59 = vld [vmem:[#allocation21 + $0x68] sm:$0xff] }
 0x86e   :  { %v3030_v61 = vpop.f32.mrf.mxu1  ;;  %v3068_v62 = vpop.f32.mrf.mxu0 }
 0x86f   :  { %v1837_v0 = vadd.f32 %v2504_v57, %v1812_v60  ;;  %v1827_v1 = vadd.f32 %v3068_v62, %v3030_v61  ;;  %v1842_v6 = vmax.f32 %v1838_v63, 0.0  ;;  %v2081_v60 = vld [vmem:[#allocation21 + $0x60] sm:$0xff]  ;;  %v2080_v61 = vld [vmem:[#allocation21 + $0x58] sm:$0xff]  ;;  %v2079_v62 = vld [vmem:[#allocation21 + $0x50] sm:$0xff] }
 0x870   :  { %v1736_v2 = vpop.f32.mrf.mxu1  ;;  %v1821_v4 = vpop.f32.mrf.mxu0  ;;  %v2078_v63 = vld [vmem:[#allocation21 + $0x48] sm:$0xff] }
 0x871   :  { %v1841_v5 = vmax.f32 %v1837_v0, 0.0  ;;  %v1822_v3 = vadd.f32 %v1821_v4, %v1736_v2  ;;  %v1840_v7 = vadd.f32 %v2504_v57, %v1827_v1  ;;  %v2077_v0 = vld [vmem:[#allocation21 + $0x40] sm:$0xff]  ;;  %v2076_v1 = vld [vmem:[#allocation21 + $0x38] sm:$0xff]  ;;  %v2075_v2 = vld [vmem:[#allocation21 + $0x30] sm:$0xff] }
 0x872   :  { %v2074_v4 = vld [vmem:[#allocation21 + $0x28] sm:$0xff] }
 0x873   :  { %v1839_v8 = vadd.f32 %v2504_v57, %v1822_v3  ;;  %v1847_v9 = vadd.f32 %v1842_v6, %v1841_v5  ;;  %v1844_v11 = vmax.f32 %v1840_v7, 0.0  ;;  %v2084_v57 = vld [vmem:[#allocation21 + $0x78] sm:$0xff]  ;;  %v2070_v7 = vld [vmem:[#allocation21 + $0x8] sm:$0xff] }
 0x874   :  { %3107 = vmatprep.subr.mxu0 %v2084_v57  ;;  %v2072_v3 = vld [vmem:[#allocation21 + $0x18] sm:$0xff] }
 0x875   :  { %v1843_v10 = vmax.f32 %v1839_v8, 0.0  ;;  %3108 = vmatpush3.msra.mxu0 %v2084_v57  ;;  %v2069_v8 = vld [vmem:[#allocation21] sm:$0xff] }
 0x876   :  { %3109 = vmatprep.subr.mxu0 %v2083_v58 }
 0x877   :  { %v1848_v12 = vadd.f32 %v1847_v9, %v1843_v10  ;;  %3110 = vmatpush3.msra.mxu0 %v2083_v58  ;;  %v2509_v58 = vld [vmem:[%s3975_s15] ss:$0 sm:$0xff] }
 0x878   :  { %3111 = vmatprep.subr.mxu0 %v2082_v59 }
 0x879   :  { %v1849_v13 = vadd.f32 %v1848_v12, %v1844_v11  ;;  %3112 = vmatpush3.msra.mxu0 %v2082_v59 }
 0x87a   :  { %3113 = vmatprep.subr.mxu0 %v2081_v60 }
 0x87b   :  { %v1850_v14 = vrot.slane %v1849_v13, 4  ;;  %3114 = vmatpush3.msra.mxu0 %v2081_v60 }
 0x87c   :  { %3115 = vmatprep.subr.mxu0 %v2080_v61 }
 0x87d   :  { %v1851_v15 = vadd.f32 %v1850_v14, %v1849_v13  ;;  %3116 = vmatpush3.msra.mxu0 %v2080_v61 }
 0x87e   :  { %3117 = vmatprep.subr.mxu0 %v2079_v62 }
 0x87f   :  { %v1852_v16 = vrot.slane %v1851_v15, 2  ;;  %3118 = vmatpush3.msra.mxu0 %v2079_v62 }
 0x880   :  { %3119 = vmatprep.subr.mxu0 %v2078_v63 }
 0x881   :  { %v1853_v17 = vadd.f32 %v1852_v16, %v1851_v15  ;;  %3120 = vmatpush3.msra.mxu0 %v2078_v63 }
 0x882   :  { %3121 = vmatprep.subr.mxu0 %v2077_v0 }
 0x883   :  { %v1854_v18 = vrot.slane %v1853_v17, 1  ;;  %3122 = vmatpush3.msra.mxu0 %v2077_v0 }
 0x884   :  { %3123 = vmatprep.subr.mxu0 %v2076_v1 }
 0x885   :  { %v1855_v19 = vadd.f32 %v1854_v18, %v1853_v17  ;;  %3124 = vmatpush3.msra.mxu0 %v2076_v1 }
 0x886   :  { %3125 = vmatprep.subr.mxu0 %v2075_v2 }
 0x887   :  { %v1856_v20 = vmul.f32 0.03125, %v1855_v19  ;;  %3126 = vmatpush3.msra.mxu0 %v2075_v2 }
 0x888   :  { %3127 = vmatprep.subr.mxu0 %v2074_v4 }
 0x889   :  { %v1857_v21 = vsub.f32 %v1841_v5, %v1856_v20  ;;  %v1858_v22 = vsub.f32 %v1842_v6, %v1856_v20  ;;  %v1859_v23 = vsub.f32 %v1843_v10, %v1856_v20  ;;  %v1860_v24 = vsub.f32 %v1844_v11, %v1856_v20  ;;  %3128 = vmatpush3.msra.mxu0 %v2074_v4  ;;  %v2073_v5 = vld [vmem:[#allocation21 + $0x20] sm:$0xff]  ;;  %v2071_v6 = vld [vmem:[#allocation21 + $0x10] sm:$0xff] }
 0x88a   :  { %3129 = vmatprep.subr.mxu0 %v2073_v5  ;;  %v2507_v10 = vld [vmem:[%s3973_s13] ss:$0 sm:$0xff] }
 0x88b   :  { %v1861_v25 = vmul.f32 %v1857_v21, %v1857_v21  ;;  %v1862_v26 = vmul.f32 %v1858_v22, %v1858_v22  ;;  %v1863_v27 = vmul.f32 %v1859_v23, %v1859_v23  ;;  %v1864_v29 = vmul.f32 %v1860_v24, %v1860_v24  ;;  %3130 = vmatpush3.msra.mxu0 %v2073_v5  ;;  %v2252_v5 = vld [vmem:[#allocation22 + $0x78] sm:$0xff] }
 0x88c   :  { %3131 = vmatprep.subr.mxu0 %v2072_v3  ;;  %3145 = vmatprep.subr.mxu1 %v2252_v5 }
 0x88d   :  { %v1865_v28 = vadd.f32 %v1862_v26, %v1861_v25  ;;  %3132 = vmatpush3.msra.mxu0 %v2072_v3  ;;  %v2251_v3 = vld [vmem:[#allocation22 + $0x70] sm:$0xff] }
 0x88e   :  { %3133 = vmatprep.subr.mxu0 %v2071_v6 }
 0x88f   :  { %v1866_v30 = vadd.f32 %v1865_v28, %v1863_v27  ;;  %3134 = vmatpush3.msra.mxu0 %v2071_v6  ;;  %v2250_v6 = vld [vmem:[#allocation22 + $0x68] sm:$0xff] }
 0x890   :  { %3135 = vmatprep.subr.mxu0 %v2070_v7 }
 0x891   :  { %v1867_v31 = vadd.f32 %v1866_v30, %v1864_v29  ;;  %3136 = vmatpush3.msra.mxu0 %v2070_v7  ;;  %v2249_v7 = vld [vmem:[#allocation22 + $0x60] sm:$0xff] }
 0x892   :  { %3137 = vmatprep.subr.mxu0 %v2069_v8 }
 0x893   :  { %v1868_v32 = vrot.slane %v1867_v31, 4  ;;  %3138 = vmatpush3.msra.mxu0 %v2069_v8  ;;  %v2248_v8 = vld [vmem:[#allocation22 + $0x58] sm:$0xff] }
 0x895   :  { %v1869_v33 = vadd.f32 %v1868_v32, %v1867_v31 }
 0x897   :  { %v1870_v34 = vrot.slane %v1869_v33, 2 }
 0x899   :  { %v1871_v35 = vadd.f32 %v1870_v34, %v1869_v33 }
 0x89b   :  { %v1872_v36 = vrot.slane %v1871_v35, 1 }
 0x89d   :  { %v1873_v37 = vadd.f32 %v1872_v36, %v1871_v35 }
 0x89f   :  { %v1874_v38 = vmul.f32 0.03125, %v1873_v37 }
 0x8a1   :  { %v1875_v39 = vadd.f32 1e-05, %v1874_v38 }
 0x8a3   :  { %3258 = vrsqrt.f32 %v1875_v39 }
 0x8b0   :  { %v3259_v40 = vpop.eup %3258 }
 0x8b1   :  { %v1879_v42 = vmul.f32 %v3259_v40, %v1859_v23  ;;  %v1877_v43 = vmul.f32 %v3259_v40, %v1857_v21  ;;  %v1878_v44 = vmul.f32 %v3259_v40, %v1858_v22  ;;  %v1880_v46 = vmul.f32 %v3259_v40, %v1860_v24 }
 0x8b3   :  { %v1887_v47 = vmul.f32 %v2505_v41, %v1877_v43  ;;  %v1888_v48 = vmul.f32 %v2505_v41, %v1878_v44  ;;  %v1889_v50 = vmul.f32 %v2505_v41, %v1879_v42  ;;  %v1890_v53 = vmul.f32 %v2505_v41, %v1880_v46 }
 0x8b5   :  { %v1897_v51 = vadd.f32 %v2506_v45, %v1887_v47  ;;  %v1898_v52 = vadd.f32 %v2506_v45, %v1888_v48  ;;  %v1899_v54 = vadd.f32 %v2506_v45, %v1889_v50  ;;  %v1900_v56 = vadd.f32 %v2506_v45, %v1890_v53  ;;  %v2508_v53 = vld [vmem:[%s3974_s17] ss:$0 sm:$0xff] }
 0x8b7   :  { %3101 = vmatprep.mubr.f32.mxu1 %v1897_v51 }
 0x8b8   :  { %3102 = vmatmul.mubr.f32.vlgmr.msra.gmra.mxu1 %v1898_v52 }
 0x8b9   :  { %3104 = vmatprep.mubr.f32.mxu1 %v1899_v54  ;;  %3146 = vmatpush3.msra.mxu1 %v2252_v5  ;;  %v2512_v5 = vld [vmem:[%s3804_s19] ss:$0 sm:$0xff] }
 0x8ba   :  { %3147 = vmatprep.subr.mxu1 %v2251_v3 }
 0x8bb   :  { %3148 = vmatpush3.msra.mxu1 %v2251_v3 }
 0x8bc   :  { %3105 = vmatmul.mubr.f32.gmra.mxu1 %v1900_v56  ;;  %3149 = vmatprep.subr.mxu1 %v2250_v6 }
 0x8bd   :  { %3150 = vmatpush3.msra.mxu1 %v2250_v6 }
 0x8be   :  { %3151 = vmatprep.subr.mxu1 %v2249_v7 }
 0x8bf   :  { %3152 = vmatpush3.msra.mxu1 %v2249_v7 }
 0x8c0   :  { %3153 = vmatprep.subr.mxu1 %v2248_v8 }
 0x8c1   :  { %3154 = vmatpush3.msra.mxu1 %v2248_v8 }
 0x978   :  { %v3103_v9 = vpop.f32.mrf.mxu1 }
 0x979   :  { %v1996_v12 = vadd.f32 %v3103_v9, %v2507_v10  ;;  %v2247_v9 = vld [vmem:[#allocation22 + $0x50] sm:$0xff] }
 0x97a   :  { %v1990_v11 = vpop.f32.mrf.mxu1  ;;  %3155 = vmatprep.subr.mxu1 %v2247_v9 }
 0x97b   :  { %v1991_v13 = vadd.f32 %v2507_v10, %v1990_v11  ;;  %v2010_v17 = vmax.f32 %v1996_v12, 0.0  ;;  %3156 = vmatpush3.msra.mxu1 %v2247_v9  ;;  %v2244_v11 = vld [vmem:[#allocation22 + $0x38] sm:$0xff]  ;;  %v2243_v12 = vld [vmem:[#allocation22 + $0x30] sm:$0xff] }
 0x97c   :  { %v3106_v14 = vpop.f32.mrf.mxu1 }
 0x97d   :  { %v2009_v15 = vmax.f32 %v1991_v13, 0.0  ;;  %v2006_v18 = vadd.f32 %v3106_v14, %v2507_v10  ;;  %v2242_v13 = vld [vmem:[#allocation22 + $0x28] sm:$0xff]  ;;  %v2241_v14 = vld [vmem:[#allocation22 + $0x20] sm:$0xff] }
 0x97e   :  { %v2000_v16 = vpop.f32.mrf.mxu1 }
 0x97f   :  { %v2001_v19 = vadd.f32 %v2507_v10, %v2000_v16  ;;  %v2015_v20 = vadd.f32 %v2010_v17, %v2009_v15  ;;  %v2012_v22 = vmax.f32 %v2006_v18, 0.0  ;;  %v2246_v10 = vld [vmem:[#allocation22 + $0x48] sm:$0xff]  ;;  %v2239_v16 = vld [vmem:[#allocation22 + $0x10] sm:$0xff]  ;;  %v2237_v18 = vld [vmem:[#allocation22] sm:$0xff] }
 0x980   :  { %3157 = vmatprep.subr.mxu1 %v2246_v10 }
 0x981   :  { %v2011_v21 = vmax.f32 %v2001_v19, 0.0  ;;  %3158 = vmatpush3.msra.mxu1 %v2246_v10 }
 0x983   :  { %v2016_v23 = vadd.f32 %v2015_v20, %v2011_v21  ;;  %v2510_v20 = vld [vmem:[%s3976_s16] ss:$0 sm:$0xff] }
 0x985   :  { %v2017_v24 = vadd.f32 %v2016_v23, %v2012_v22 }
 0x987   :  { %v2018_v25 = vrot.slane %v2017_v24, 4 }
 0x989   :  { %v2019_v26 = vadd.f32 %v2018_v25, %v2017_v24 }
 0x98b   :  { %v2020_v27 = vrot.slane %v2019_v26, 2 }
 0x98d   :  { %v2021_v28 = vadd.f32 %v2020_v27, %v2019_v26 }
 0x98f   :  { %v2022_v29 = vrot.slane %v2021_v28, 1 }
 0x991   :  { %v2023_v30 = vadd.f32 %v2022_v29, %v2021_v28 }
 0x993   :  { %v2024_v31 = vmul.f32 0.03125, %v2023_v30 }
 0x995   :  { %v2025_v32 = vsub.f32 %v2009_v15, %v2024_v31  ;;  %v2026_v33 = vsub.f32 %v2010_v17, %v2024_v31  ;;  %v2027_v34 = vsub.f32 %v2011_v21, %v2024_v31  ;;  %v2028_v35 = vsub.f32 %v2012_v22, %v2024_v31  ;;  %v2240_v15 = vld [vmem:[#allocation22 + $0x18] sm:$0xff]  ;;  %v2238_v17 = vld [vmem:[#allocation22 + $0x8] sm:$0xff] }
 0x997   :  { %v2029_v36 = vmul.f32 %v2025_v32, %v2025_v32  ;;  %v2030_v37 = vmul.f32 %v2026_v33, %v2026_v33  ;;  %v2031_v38 = vmul.f32 %v2027_v34, %v2027_v34  ;;  %v2032_v40 = vmul.f32 %v2028_v35, %v2028_v35 }
 0x999   :  { %v2033_v39 = vadd.f32 %v2030_v37, %v2029_v36 }
 0x99b   :  { %v2034_v41 = vadd.f32 %v2033_v39, %v2031_v38 }
 0x99d   :  { %v2035_v42 = vadd.f32 %v2034_v41, %v2032_v40 }
 0x99f   :  { %v2036_v43 = vrot.slane %v2035_v42, 4 }
 0x9a1   :  { %v2037_v44 = vadd.f32 %v2036_v43, %v2035_v42 }
 0x9a3   :  { %v2038_v45 = vrot.slane %v2037_v44, 2 }
 0x9a5   :  { %v2039_v46 = vadd.f32 %v2038_v45, %v2037_v44 }
 0x9a7   :  { %v2040_v47 = vrot.slane %v2039_v46, 1 }
 0x9a9   :  { %v2041_v48 = vadd.f32 %v2040_v47, %v2039_v46 }
 0x9ab   :  { %v2042_v50 = vmul.f32 0.03125, %v2041_v48 }
 0x9ad   :  { %v2043_v51 = vadd.f32 1e-05, %v2042_v50 }
 0x9af   :  { %3260 = vrsqrt.f32 %v2043_v51 }
 0x9bc   :  { %v3261_v52 = vpop.eup %3260 }
 0x9bd   :  { %v2046_v54 = vmul.f32 %v3261_v52, %v2026_v33  ;;  %v2047_v56 = vmul.f32 %v3261_v52, %v2027_v34  ;;  %v2045_v57 = vmul.f32 %v3261_v52, %v2025_v32  ;;  %v2048_v59 = vmul.f32 %v3261_v52, %v2028_v35 }
 0x9bf   :  { %v2055_v60 = vmul.f32 %v2508_v53, %v2045_v57  ;;  %v2056_v61 = vmul.f32 %v2508_v53, %v2046_v54  ;;  %v2057_v62 = vmul.f32 %v2508_v53, %v2047_v56  ;;  %v2058_v1 = vmul.f32 %v2508_v53, %v2048_v59 }
 0x9c1   :  { %v2065_v63 = vadd.f32 %v2509_v58, %v2055_v60  ;;  %v2066_v0 = vadd.f32 %v2509_v58, %v2056_v61  ;;  %v2067_v2 = vadd.f32 %v2509_v58, %v2057_v62  ;;  %v2068_v4 = vadd.f32 %v2509_v58, %v2058_v1 }
 0x9c3   :  { %3139 = vmatprep.mubr.f32.mxu0 %v2065_v63 }
 0x9c4   :  { %3140 = vmatmul.mubr.f32.vlgmr.msra.gmra.mxu0 %v2066_v0  ;;  %v2511_v0 = vld [vmem:[%s3977_s18] ss:$0 sm:$0xff] }
 0x9c5   :  { %3142 = vmatprep.mubr.f32.mxu0 %v2067_v2 }
 0x9c8   :  { %3143 = vmatmul.mubr.f32.gmra.mxu0 %v2068_v4 }
 0x9c9   :  { %3191 = vmatprep.mubr.msk.f32.mxu0 %vm1376_vm1, %v3901_v55  ;;  %v2245_v55 = vld [vmem:[#allocation22 + $0x40] sm:$0xff] }
 0x9ca   :  { %3159 = vmatprep.subr.mxu1 %v2245_v55 }
 0x9cb   :  { %3160 = vmatpush3.msra.mxu1 %v2245_v55 }
 0x9cc   :  { %3161 = vmatprep.subr.mxu1 %v2244_v11 }
 0x9cd   :  { %3162 = vmatpush3.msra.mxu1 %v2244_v11 }
 0x9ce   :  { %3163 = vmatprep.subr.mxu1 %v2243_v12 }
 0x9cf   :  { %3164 = vmatpush3.msra.mxu1 %v2243_v12 }
 0x9d0   :  { %3165 = vmatprep.subr.mxu1 %v2242_v13 }
 0x9d1   :  { %3166 = vmatpush3.msra.mxu1 %v2242_v13 }
 0x9d2   :  { %3167 = vmatprep.subr.mxu1 %v2241_v14 }
 0x9d3   :  { %3168 = vmatpush3.msra.mxu1 %v2241_v14 }
 0x9d4   :  { %3169 = vmatprep.subr.mxu1 %v2240_v15 }
 0x9d5   :  { %3170 = vmatpush3.msra.mxu1 %v2240_v15  ;;  %v2513_v15 = vld [vmem:[%s3814_s4] ss:$0 sm:$0xff] }
 0x9d6   :  { %3171 = vmatprep.subr.mxu1 %v2239_v16 }
 0x9d7   :  { %3172 = vmatpush3.msra.mxu1 %v2239_v16 }
 0x9d8   :  { %3173 = vmatprep.subr.mxu1 %v2238_v17 }
 0x9d9   :  { %3174 = vmatpush3.msra.mxu1 %v2238_v17 }
 0x9da   :  { %3175 = vmatprep.subr.mxu1 %v2237_v18 }
 0x9db   :  { %3176 = vmatpush3.msra.mxu1 %v2237_v18 }
 0xa84   :  { %v3141_v19 = vpop.f32.mrf.mxu0 }
 0xa85   :  { %v2164_v22 = vadd.f32 %v3141_v19, %v2510_v20 }
 0xa86   :  { %v2158_v21 = vpop.f32.mrf.mxu0 }
 0xa87   :  { %v2159_v23 = vadd.f32 %v2510_v20, %v2158_v21  ;;  %v2178_v27 = vmax.f32 %v2164_v22, 0.0 }
 0xa88   :  { %v3144_v24 = vpop.f32.mrf.mxu0 }
 0xa89   :  { %v2177_v25 = vmax.f32 %v2159_v23, 0.0  ;;  %v2174_v28 = vadd.f32 %v3144_v24, %v2510_v20 }
 0xa8a   :  { %v2168_v26 = vpop.f32.mrf.mxu0 }
 0xa8b   :  { %v2169_v29 = vadd.f32 %v2510_v20, %v2168_v26  ;;  %v2183_v30 = vadd.f32 %v2178_v27, %v2177_v25  ;;  %v2180_v32 = vmax.f32 %v2174_v28, 0.0 }
 0xa8d   :  { %v2179_v31 = vmax.f32 %v2169_v29, 0.0 }
 0xa8f   :  { %v2184_v33 = vadd.f32 %v2183_v30, %v2179_v31 }
 0xa91   :  { %v2185_v34 = vadd.f32 %v2184_v33, %v2180_v32 }
 0xa93   :  { %v2186_v35 = vrot.slane %v2185_v34, 4 }
 0xa95   :  { %v2187_v36 = vadd.f32 %v2186_v35, %v2185_v34 }
 0xa97   :  { %v2188_v37 = vrot.slane %v2187_v36, 2 }
 0xa99   :  { %v2189_v38 = vadd.f32 %v2188_v37, %v2187_v36 }
 0xa9b   :  { %v2190_v39 = vrot.slane %v2189_v38, 1 }
 0xa9d   :  { %v2191_v40 = vadd.f32 %v2190_v39, %v2189_v38 }
 0xa9f   :  { %v2192_v41 = vmul.f32 0.03125, %v2191_v40 }
 0xaa1   :  { %v2193_v42 = vsub.f32 %v2177_v25, %v2192_v41  ;;  %v2194_v43 = vsub.f32 %v2178_v27, %v2192_v41  ;;  %v2195_v44 = vsub.f32 %v2179_v31, %v2192_v41  ;;  %v2196_v45 = vsub.f32 %v2180_v32, %v2192_v41 }
 0xaa3   :  { %v2197_v46 = vmul.f32 %v2193_v42, %v2193_v42  ;;  %v2198_v47 = vmul.f32 %v2194_v43, %v2194_v43  ;;  %v2199_v48 = vmul.f32 %v2195_v44, %v2195_v44  ;;  %v2200_v51 = vmul.f32 %v2196_v45, %v2196_v45 }
 0xaa5   :  { %v2201_v50 = vadd.f32 %v2198_v47, %v2197_v46 }
 0xaa7   :  { %v2202_v52 = vadd.f32 %v2201_v50, %v2199_v48 }
 0xaa9   :  { %v2203_v53 = vadd.f32 %v2202_v52, %v2200_v51 }
 0xaab   :  { %v2204_v54 = vrot.slane %v2203_v53, 4 }
 0xaad   :  { %v2205_v56 = vadd.f32 %v2204_v54, %v2203_v53 }
 0xaaf   :  { %v2206_v57 = vrot.slane %v2205_v56, 2 }
 0xab1   :  { %v2207_v58 = vadd.f32 %v2206_v57, %v2205_v56 }
 0xab3   :  { %v2208_v59 = vrot.slane %v2207_v58, 1 }
 0xab5   :  { %v2209_v60 = vadd.f32 %v2208_v59, %v2207_v58 }
 0xab7   :  { %v2210_v61 = vmul.f32 0.03125, %v2209_v60 }
 0xab9   :  { %v2211_v62 = vadd.f32 1e-05, %v2210_v61 }
 0xabb   :  { %3262 = vrsqrt.f32 %v2211_v62 }
 0xac8   :  { %v3263_v63 = vpop.eup %3262 }
 0xac9   :  { %v2214_v1 = vmul.f32 %v3263_v63, %v2194_v43  ;;  %v2215_v2 = vmul.f32 %v3263_v63, %v2195_v44  ;;  %v2213_v4 = vmul.f32 %v3263_v63, %v2193_v42  ;;  %v2216_v3 = vmul.f32 %v3263_v63, %v2196_v45 }
 0xacb   :  { %v2223_v6 = vmul.f32 %v2511_v0, %v2213_v4  ;;  %v2224_v7 = vmul.f32 %v2511_v0, %v2214_v1  ;;  %v2225_v8 = vmul.f32 %v2511_v0, %v2215_v2  ;;  %v2226_v55 = vmul.f32 %v2511_v0, %v2216_v3 }
 0xacd   :  { %v2233_v9 = vadd.f32 %v2512_v5, %v2223_v6  ;;  %v2234_v10 = vadd.f32 %v2512_v5, %v2224_v7  ;;  %v2235_v11 = vadd.f32 %v2512_v5, %v2225_v8  ;;  %v2236_v12 = vadd.f32 %v2512_v5, %v2226_v55 }
 0xacf   :  { %3177 = vmatprep.mubr.f32.mxu1 %v2233_v9 }
 0xad0   :  { %3178 = vmatmul.mubr.f32.vlgmr.msra.gmra.mxu1 %v2234_v10 }
 0xad1   :  { %3180 = vmatprep.mubr.f32.mxu1 %v2235_v11 }
 0xad4   :  { %3181 = vmatmul.mubr.f32.gmra.mxu1 %v2236_v12 }
 0xb90   :  { %v3179_v13 = vpop.f32.mrf.mxu1 }
 0xb91   :  { %v2332_v20 = vadd.f32 %v3179_v13, %v2513_v15 }
 0xb92   :  { %v2326_v14 = vpop.f32.mrf.mxu1 }
 0xb93   :  { %v2327_v21 = vadd.f32 %v2513_v15, %v2326_v14 }
 0xb94   :  { %v3182_v16 = vpop.f32.mrf.mxu1 }
 0xb95   :  { %v2342_v17 = vadd.f32 %v3182_v16, %v2513_v15 }
 0xb96   :  { %v2336_v18 = vpop.f32.mrf.mxu1 }
 0xb97   :  { %v2337_v19 = vadd.f32 %v2513_v15, %v2336_v18  ;;  %3183 = vmatprep.subr.mxu0 %v2342_v17 }
 0xb98   :  { %3184 = vmatpush3.msra.mxu0 %v2342_v17 }
 0xb99   :  { %3185 = vmatprep.subr.mxu0 %v2337_v19 }
 0xb9a   :  { %3186 = vmatpush3.msra.mxu0 %v2337_v19 }
 0xb9b   :  { %3187 = vmatprep.subr.mxu0 %v2332_v20 }
 0xb9c   :  { %3188 = vmatpush3.msra.mxu0 %v2332_v20 }
 0xb9d   :  { %3189 = vmatprep.subr.mxu0 %v2327_v21 }
 0xb9e   :  { %3190 = vmatpush3.msra.mxu0 %v2327_v21 }
 0xb9f   :  { %3192 = vmatmul.mubr.msk.f32.vlgmr.msra.gmra.mxu0 %vm1376_vm1, %v3908_v49 }
 0xc5f   :  { %v3193_v22 = vpop.f32.mrf.mxu0 }
 0xc60   :  { %2421 = vst [vmem:[%s3819_s12 + $0x8] sm:$0xff] %v3193_v22 }
 0xc61   :  { %v2411_v23 = vpop.f32.mrf.mxu0 }
 0xc62   :  { %2420 = vst [vmem:[%s3819_s12] sm:$0xff] %v2411_v23 }
 0xc63   :  { %2426 = vsyncpa [#allocation3], 1 }
 0xc64   :  { %2427 = vsyncpa [#allocation5], 1 }
 0xc65   :  { %2428 = vsyncpa [#allocation8], 1 }
 0xc66   :  { %2429 = vsyncpa [#allocation11], 1 }
 0xc67   :  { %2430 = vsyncpa [#allocation14], 1 }
 0xc68   :  { %2431 = vsyncpa [#allocation17], 1 }
 0xc69   :  { %2432 = vsyncpa [#allocation20], 1 }
 0xc6a   :  { %2433 = vsyncpa [#allocation23], 1 }

</bundles_post_ra>
